<compile_context>
chip_gen: v5e
topology: v5e:2x2
jax: 0.10.0
libtpu: 0.0.40
codegen_flags: <defaults>
</compile_context>

<pallas_src>
import functools
import math

import jax
import jax.numpy as jnp
from jax import lax
from jax.experimental import pallas as pl
from jax.experimental.pallas import tpu as pltpu

# ----- small synthetic BERT config (self.bert.config.hidden_size -> HIDDEN) -----
VOCAB = 128
HIDDEN = 32
N_LAYERS = 2
N_HEADS = 2
HEAD_DIM = HIDDEN // N_HEADS
FFN = 64
MAX_POS = 16
N_CLASSES = 7            # len(emotion_classes)
LN_EPS = 1e-12

# Lane-dense padded sizes (last dims are multiples of 128).
H_PAD = 128                       # padded hidden width
HDP = 128                         # padded per-head dim -> each head owns a lane tile
QKV_PAD = 3 * N_HEADS * HDP       # 768 : [q_h0 | q_h1 | k_h0 | k_h1 | v_h0 | v_h1]
FFN_PAD = 128
N_CLASSES_PAD = 128

# Packed small-vector slab row layout (all rows are H_PAD wide, f32).
_VEC_EMB_G, _VEC_EMB_B, _VEC_POOL_B, _VEC_CLS_B = 0, 1, 2, 3
_VEC_PER_LAYER = 7                # ao_b, ln1_g, ln1_b, f1_b, f2_b, ln2_g, ln2_b
_VEC_ROWS = 4 + _VEC_PER_LAYER * N_LAYERS


# ----------------------------- fused Pallas kernel ---------------------------

def _layernorm_padded(x, g, b):
    """LayerNorm over the first HIDDEN features of a zero-padded (rows, H_PAD) slab.

    Padded lanes of x are zero, so sums over the full 128 lanes equal sums over the
    real features; gamma/beta are zero-padded, so padded lanes stay exactly zero.
    """
    s1 = jnp.sum(x, axis=-1, keepdims=True)
    s2 = jnp.sum(x * x, axis=-1, keepdims=True)
    mu = s1 * (1.0 / HIDDEN)
    var = s2 * (1.0 / HIDDEN) - mu * mu
    return (x - mu) * lax.rsqrt(var + LN_EPS) * g + b


def _fused_bert_kernel(h_ref, mask_ref, vec_ref,
                       qkv_w_ref, qkv_b_ref, ao_w_ref, f1_w_ref, f2_w_ref,
                       pool_w_ref, cls_w_ref, out_ref, *, batch, seq):
    vec = vec_ref[...]                                     # (VEC_ROWS, H_PAD) f32

    def vrow(i):                                           # (1, H_PAD) static slice
        return vec[i:i + 1, :]

    # Embedding LayerNorm; mask loaded once (hoisted out of all loops).
    h = _layernorm_padded(h_ref[...], vrow(_VEC_EMB_G), vrow(_VEC_EMB_B))  # (B*S, H_PAD)
    mask = mask_ref[...]                                   # (B, 1, S) additive

    for l in range(N_LAYERS):            # static & tiny -> fully unrolled at trace time
        base = 4 + _VEC_PER_LAYER * l
        ao_b, ln1_g, ln1_b = vrow(base), vrow(base + 1), vrow(base + 2)
        f1_b, f2_b = vrow(base + 3), vrow(base + 4)
        ln2_g, ln2_b = vrow(base + 5), vrow(base + 6)

        # ---- fused lane-dense QKV projection (1/sqrt(dh) pre-folded into Q) ----
        qkv = jnp.dot(h.astype(jnp.bfloat16), qkv_w_ref[l],
                      preferred_element_type=jnp.float32) + qkv_b_ref[l]   # (B*S, QKV_PAD)

        # ---- attention: batched einsums per head (lane-tile-aligned slices,
        #      no concat / no transpose); head outputs fused into the output
        #      projection as per-head row-block matmuls summed together. ----
        ao_w_l = ao_w_ref[l]                               # (N_HEADS*HDP, H_PAD) bf16
        attn_out = None
        for hh in range(N_HEADS):
            cq = (0 * N_HEADS + hh) * HDP
            ck = (1 * N_HEADS + hh) * HDP
            cv = (2 * N_HEADS + hh) * HDP
            q3 = qkv[:, cq:cq + HDP].reshape(batch, seq, HDP).astype(jnp.bfloat16)
            k3 = qkv[:, ck:ck + HDP].reshape(batch, seq, HDP).astype(jnp.bfloat16)
            v3 = qkv[:, cv:cv + HDP].reshape(batch, seq, HDP).astype(jnp.bfloat16)

            s = jnp.einsum('bqd,bkd->bqk', q3, k3,
                           preferred_element_type=jnp.float32)             # (B, S, S)
            s = s + mask
            s = s - jnp.max(s, axis=-1, keepdims=True)
            p = jnp.exp(s)
            p = p * pl.reciprocal(jnp.sum(p, axis=-1, keepdims=True), approx=True)

            ctx = jnp.einsum('bqk,bkd->bqd', p.astype(jnp.bfloat16), v3,
                             preferred_element_type=jnp.float32)           # (B, S, HDP)
            ctx = ctx.reshape(batch * seq, HDP).astype(jnp.bfloat16)
            contrib = jnp.dot(ctx, ao_w_l[hh * HDP:(hh + 1) * HDP, :],
                              preferred_element_type=jnp.float32)          # (B*S, H_PAD)
            attn_out = contrib if attn_out is None else attn_out + contrib

        # ---- attention output bias + residual + LN1 (fused epilogue) ----
        h = _layernorm_padded(attn_out + ao_b + h, ln1_g, ln1_b)

        # ---- FFN: gelu(h @ W1 + b1) @ W2 + b2, residual + LN2 ----
        f1 = jnp.dot(h.astype(jnp.bfloat16), f1_w_ref[l],
                     preferred_element_type=jnp.float32) + f1_b
        f1 = jax.nn.gelu(f1, approximate=True)
        # TODO(synk): HF/KoBERT BERT uses the exact erf-based GELU; tanh approx kept here.
        f2 = jnp.dot(f1.astype(jnp.bfloat16), f2_w_ref[l],
                     preferred_element_type=jnp.float32) + f2_b
        h = _layernorm_padded(f2 + h, ln2_g, ln2_b)

    # ---- pooler on [CLS] tokens: single reshape + slice (no per-row gather) ----
    cls = h.reshape(batch, seq, H_PAD)[:, 0, :]            # (B, H_PAD)
    pooled = jnp.tanh(jnp.dot(cls.astype(jnp.bfloat16), pool_w_ref[...],
                              preferred_element_type=jnp.float32) + vrow(_VEC_POOL_B))

    # self.dropout(0.3): identity at inference.
    # TODO(synk): training-mode dropout (pltpu PRNG mask) not implemented.
    logits = jnp.dot(pooled.astype(jnp.bfloat16), cls_w_ref[...],
                     preferred_element_type=jnp.float32) + vrow(_VEC_CLS_B)
    out_ref[...] = logits.astype(out_ref.dtype)            # (B, N_CLASSES_PAD)


# ----------------------------- parameters ------------------------------------

def init_params(key):
    """PyTorch-faithful (unpadded) parameter shapes."""
    ks = jax.random.split(key, 10)

    def w(k, shape):
        return 0.02 * jax.random.normal(k, shape, jnp.float32)

    return dict(
        word_emb=w(ks[0], (VOCAB, HIDDEN)),
        pos_emb=w(ks[1], (MAX_POS, HIDDEN)),
        type_emb=w(ks[2], (2, HIDDEN)),
        emb_ln_g=jnp.ones((HIDDEN,), jnp.float32),
        emb_ln_b=jnp.zeros((HIDDEN,), jnp.float32),
        qkv_w=w(ks[3], (N_LAYERS, HIDDEN, 3 * HIDDEN)),
        qkv_b=jnp.zeros((N_LAYERS, 3 * HIDDEN), jnp.float32),
        ao_w=w(ks[4], (N_LAYERS, HIDDEN, HIDDEN)),
        ao_b=jnp.zeros((N_LAYERS, HIDDEN), jnp.float32),
        ln1_g=jnp.ones((N_LAYERS, HIDDEN), jnp.float32),
        ln1_b=jnp.zeros((N_LAYERS, HIDDEN), jnp.float32),
        f1_w=w(ks[5], (N_LAYERS, HIDDEN, FFN)),
        f1_b=jnp.zeros((N_LAYERS, FFN), jnp.float32),
        f2_w=w(ks[6], (N_LAYERS, FFN, HIDDEN)),
        f2_b=jnp.zeros((N_LAYERS, HIDDEN), jnp.float32),
        ln2_g=jnp.ones((N_LAYERS, HIDDEN), jnp.float32),
        ln2_b=jnp.zeros((N_LAYERS, HIDDEN), jnp.float32),
        pool_w=w(ks[7], (HIDDEN, HIDDEN)),
        pool_b=jnp.zeros((HIDDEN,), jnp.float32),
        cls_w=w(ks[8], (HIDDEN, N_CLASSES)),
        cls_b=jnp.zeros((N_CLASSES,), jnp.float32),
    )


def _pad_vec(v, width=H_PAD):
    return jnp.pad(v, (0, width - v.shape[0])).reshape(1, width)


def pack_params(p):
    """Pad to lane-dense layouts, fold the attention scale, cast weights to bf16,
    and pack all tiny bias/LN vectors into one slab (fewer pallas operands)."""
    scale = 1.0 / math.sqrt(HEAD_DIM)

    # QKV weights/bias -> head-padded lane-dense layout; fold 1/sqrt(dh) into Q.
    qkv_w = jnp.zeros((N_LAYERS, H_PAD, QKV_PAD), jnp.float32)
    qkv_b = jnp.zeros((N_LAYERS, 1, QKV_PAD), jnp.float32)
    for sec in range(3):                     # 0 = q, 1 = k, 2 = v
        s = scale if sec == 0 else 1.0
        for hh in range(N_HEADS):
            src_c = sec * HIDDEN + hh * HEAD_DIM
            dst_c = (sec * N_HEADS + hh) * HDP
            qkv_w = qkv_w.at[:, :HIDDEN, dst_c:dst_c + HEAD_DIM].set(
                s * p["qkv_w"][:, :, src_c:src_c + HEAD_DIM])
            qkv_b = qkv_b.at[:, 0, dst_c:dst_c + HEAD_DIM].set(
                s * p["qkv_b"][:, src_c:src_c + HEAD_DIM])

    # Attention output projection: rows laid out per padded head block.
    ao_w = jnp.zeros((N_LAYERS, N_HEADS * HDP, H_PAD), jnp.float32)
    for hh in range(N_HEADS):
        ao_w = ao_w.at[:, hh * HDP:hh * HDP + HEAD_DIM, :HIDDEN].set(
            p["ao_w"][:, hh * HEAD_DIM:(hh + 1) * HEAD_DIM, :])

    def pad_mat(m, rows, cols):
        pad = ((0, 0),) * (m.ndim - 2) + ((0, rows - m.shape[-2]),
                                          (0, cols - m.shape[-1]))
        return jnp.pad(m, pad)

    f1_w = pad_mat(p["f1_w"], H_PAD, FFN_PAD)
    f2_w = pad_mat(p["f2_w"], FFN_PAD, H_PAD)
    pool_w = pad_mat(p["pool_w"], H_PAD, H_PAD)
    cls_w = pad_mat(p["cls_w"], H_PAD, N_CLASSES_PAD)

    # Packed small-vector slab (single operand / single DMA descriptor).
    rows = [_pad_vec(p["emb_ln_g"]), _pad_vec(p["emb_ln_b"]),
            _pad_vec(p["pool_b"]), _pad_vec(p["cls_b"])]
    for l in range(N_LAYERS):
        rows += [_pad_vec(p["ao_b"][l]), _pad_vec(p["ln1_g"][l]), _pad_vec(p["ln1_b"][l]),
                 _pad_vec(p["f1_b"][l]), _pad_vec(p["f2_b"][l]),
                 _pad_vec(p["ln2_g"][l]), _pad_vec(p["ln2_b"][l])]
    vec_slab = jnp.concatenate(rows, axis=0)               # (_VEC_ROWS, H_PAD)

    return dict(
        word_emb=p["word_emb"], pos_emb=p["pos_emb"], type_emb=p["type_emb"],
        vec_slab=vec_slab,
        qkv_w=qkv_w.astype(jnp.bfloat16), qkv_b=qkv_b,
        ao_w=ao_w.astype(jnp.bfloat16),
        f1_w=f1_w.astype(jnp.bfloat16), f2_w=f2_w.astype(jnp.bfloat16),
        pool_w=pool_w.astype(jnp.bfloat16), cls_w=cls_w.astype(jnp.bfloat16),
    )


# ----------------------------- forward pass ----------------------------------

def bert_classifier_forward(params, input_ids, attention_mask):
    """input_ids: (B, S) int32, attention_mask: (B, S) {0,1} -> logits (B, 7)."""
    B, S = input_ids.shape

    # Embedding gather kept in plain JAX glue (tiny tables, data-dependent gather),
    # then padded once to the lane-dense width.
    h0 = (params["word_emb"][input_ids]
          + params["pos_emb"][:S][None, :, :]
          + params["type_emb"][0][None, None, :]).reshape(B * S, HIDDEN)
    h0 = jnp.pad(h0, ((0, 0), (0, H_PAD - HIDDEN)))

    # BERT-style additive mask, shared across heads/query rows: (B, 1, S).
    add_mask = ((1.0 - attention_mask.astype(jnp.float32)) * -10000.0).reshape(B, 1, S)

    inputs = (h0, add_mask, params["vec_slab"],
              params["qkv_w"], params["qkv_b"], params["ao_w"],
              params["f1_w"], params["f2_w"], params["pool_w"], params["cls_w"])

    # Rough cost hint so XLA schedules the surrounding ops sensibly.
    flops = 2 * B * S * N_LAYERS * (H_PAD * QKV_PAD
                                    + N_HEADS * (2 * S * HDP + HDP * H_PAD)
                                    + 2 * H_PAD * FFN_PAD)
    flops += 2 * B * (H_PAD * H_PAD + H_PAD * N_CLASSES_PAD)
    transcendentals = N_LAYERS * (N_HEADS * B * S * S + B * S * FFN_PAD) + B * H_PAD
    bytes_accessed = sum(int(x.size) * x.dtype.itemsize for x in inputs) \
        + B * N_CLASSES_PAD * 4

    kern = functools.partial(_fused_bert_kernel, batch=B, seq=S)
    logits_pad = pl.pallas_call(
        kern,
        out_shape=jax.ShapeDtypeStruct((B, N_CLASSES_PAD), jnp.float32),
        # No grid: single invocation, every operand fully resident in VMEM.
        in_specs=[pl.BlockSpec(memory_space=pltpu.MemorySpace.VMEM) for _ in inputs],
        out_specs=pl.BlockSpec(memory_space=pltpu.MemorySpace.VMEM),
        compiler_params=pltpu.CompilerParams(vmem_limit_bytes=32 * 1024 * 1024),
        cost_estimate=pl.CostEstimate(flops=flops, transcendentals=transcendentals,
                                      bytes_accessed=bytes_accessed),
    )(*inputs)
    return logits_pad[:, :N_CLASSES]


# ----------------------------------- main ------------------------------------

if __name__ == "__main__":
    key = jax.random.PRNGKey(0)
    k_param, k_ids = jax.random.split(key)

    B, S = 2, 8
    params = pack_params(init_params(k_param))
    input_ids = jax.random.randint(k_ids, (B, S), 0, VOCAB, dtype=jnp.int32)
    attention_mask = jnp.array([[1, 1, 1, 1, 1, 1, 0, 0],
                                [1, 1, 1, 1, 0, 0, 0, 0]], dtype=jnp.int32)

    logits = bert_classifier_forward(params, input_ids, attention_mask)
    logits = jax.block_until_ready(logits)
    assert logits.shape == (B, N_CLASSES) and logits.dtype == jnp.float32
    assert bool(jnp.all(jnp.isfinite(logits)))
    print("KERNEL_OK")
</pallas_src>

<mosaic_0001>
module attributes {stable_mosaic.version = 11 : i64} {
  func.func @_fused_bert_kernel(%arg0: memref<16x128xf32, #tpu.memory_space<vmem>>, %arg1: memref<2x1x8xf32, #tpu.memory_space<vmem>>, %arg2: memref<18x128xf32, #tpu.memory_space<vmem>>, %arg3: memref<2x128x768xbf16, #tpu.memory_space<vmem>>, %arg4: memref<2x1x768xf32, #tpu.memory_space<vmem>>, %arg5: memref<2x256x128xbf16, #tpu.memory_space<vmem>>, %arg6: memref<2x128x128xbf16, #tpu.memory_space<vmem>>, %arg7: memref<2x128x128xbf16, #tpu.memory_space<vmem>>, %arg8: memref<128x128xbf16, #tpu.memory_space<vmem>>, %arg9: memref<128x128xbf16, #tpu.memory_space<vmem>>, %arg10: memref<2x128xf32, #tpu.memory_space<vmem>>) attributes {dimension_semantics = [], scalar_prefetch = 0 : i64, scratch_operands = 0 : i64, tpu.core_type = #tpu.core_type<tc>} {
    %c0 = arith.constant 0 : index
    %c0_0 = arith.constant 0 : index
    %0 = vector.load %arg2[%c0, %c0_0] : memref<18x128xf32, #tpu.memory_space<vmem>>, vector<18x128xf32>
    %c0_1 = arith.constant 0 : index
    %c0_2 = arith.constant 0 : index
    %1 = vector.load %arg0[%c0_1, %c0_2] : memref<16x128xf32, #tpu.memory_space<vmem>>, vector<16x128xf32>
    %2 = vector.extract_strided_slice %0 {offsets = [0, 0], sizes = [1, 128], strides = [1, 1]} : vector<18x128xf32> to vector<1x128xf32>
    %3 = vector.extract_strided_slice %0 {offsets = [1, 0], sizes = [1, 128], strides = [1, 1]} : vector<18x128xf32> to vector<1x128xf32>
    %cst = arith.constant dense<0.000000e+00> : vector<16xf32>
    %4 = vector.multi_reduction <add>, %1, %cst [1] : vector<16x128xf32> to vector<16xf32>
    %5 = vector.shape_cast %4 : vector<16xf32> to vector<16x1xf32>
    %6 = arith.mulf %1, %1 : vector<16x128xf32>
    %cst_3 = arith.constant dense<0.000000e+00> : vector<16xf32>
    %7 = vector.multi_reduction <add>, %6, %cst_3 [1] : vector<16x128xf32> to vector<16xf32>
    %8 = vector.shape_cast %7 : vector<16xf32> to vector<16x1xf32>
    %cst_4 = arith.constant 3.125000e-02 : f32
    %9 = vector.broadcast %cst_4 : f32 to vector<16x1xf32>
    %10 = arith.mulf %5, %9 : vector<16x1xf32>
    %cst_5 = arith.constant 3.125000e-02 : f32
    %11 = vector.broadcast %cst_5 : f32 to vector<16x1xf32>
    %12 = arith.mulf %8, %11 : vector<16x1xf32>
    %13 = arith.mulf %10, %10 : vector<16x1xf32>
    %14 = arith.subf %12, %13 : vector<16x1xf32>
    %15 = vector.broadcast %10 : vector<16x1xf32> to vector<16x128xf32>
    %16 = arith.subf %1, %15 : vector<16x128xf32>
    %cst_6 = arith.constant 9.99999996E-13 : f32
    %17 = vector.broadcast %cst_6 : f32 to vector<16x1xf32>
    %18 = arith.addf %14, %17 : vector<16x1xf32>
    %19 = math.rsqrt %18 : vector<16x1xf32>
    %20 = vector.broadcast %19 : vector<16x1xf32> to vector<16x128xf32>
    %21 = arith.mulf %16, %20 : vector<16x128xf32>
    %22 = vector.broadcast %2 : vector<1x128xf32> to vector<16x128xf32>
    %23 = arith.mulf %21, %22 : vector<16x128xf32>
    %24 = vector.broadcast %3 : vector<1x128xf32> to vector<16x128xf32>
    %25 = arith.addf %23, %24 : vector<16x128xf32>
    %c0_7 = arith.constant 0 : index
    %c0_8 = arith.constant 0 : index
    %c0_9 = arith.constant 0 : index
    %26 = vector.load %arg1[%c0_7, %c0_8, %c0_9] : memref<2x1x8xf32, #tpu.memory_space<vmem>>, vector<2x1x8xf32>
    %27 = vector.extract_strided_slice %0 {offsets = [4, 0], sizes = [1, 128], strides = [1, 1]} : vector<18x128xf32> to vector<1x128xf32>
    %28 = vector.extract_strided_slice %0 {offsets = [5, 0], sizes = [1, 128], strides = [1, 1]} : vector<18x128xf32> to vector<1x128xf32>
    %29 = vector.extract_strided_slice %0 {offsets = [6, 0], sizes = [1, 128], strides = [1, 1]} : vector<18x128xf32> to vector<1x128xf32>
    %30 = vector.extract_strided_slice %0 {offsets = [7, 0], sizes = [1, 128], strides = [1, 1]} : vector<18x128xf32> to vector<1x128xf32>
    %31 = vector.extract_strided_slice %0 {offsets = [8, 0], sizes = [1, 128], strides = [1, 1]} : vector<18x128xf32> to vector<1x128xf32>
    %32 = vector.extract_strided_slice %0 {offsets = [9, 0], sizes = [1, 128], strides = [1, 1]} : vector<18x128xf32> to vector<1x128xf32>
    %33 = vector.extract_strided_slice %0 {offsets = [10, 0], sizes = [1, 128], strides = [1, 1]} : vector<18x128xf32> to vector<1x128xf32>
    %34 = arith.truncf %25 : vector<16x128xf32> to vector<16x128xbf16>
    %c0_10 = arith.constant 0 : index
    %c0_11 = arith.constant 0 : index
    %c0_12 = arith.constant 0 : index
    %35 = vector.load %arg3[%c0_10, %c0_11, %c0_12] : memref<2x128x768xbf16, #tpu.memory_space<vmem>>, vector<1x128x768xbf16>
    %36 = vector.shape_cast %35 : vector<1x128x768xbf16> to vector<128x768xbf16>
    %cst_13 = arith.constant dense<0.000000e+00> : vector<16x768xf32>
    %37 = tpu.matmul %34, %36, %cst_13 {dimension_numbers = #tpu.dot_dimension_numbers<[1], [0], [0], [1], [0, 0, 1, 1], [], []>} : vector<16x128xbf16>, vector<128x768xbf16>, vector<16x768xf32> -> vector<16x768xf32>
    %c0_14 = arith.constant 0 : index
    %c0_15 = arith.constant 0 : index
    %c0_16 = arith.constant 0 : index
    %38 = vector.load %arg4[%c0_14, %c0_15, %c0_16] : memref<2x1x768xf32, #tpu.memory_space<vmem>>, vector<1x1x768xf32>
    %39 = vector.shape_cast %38 : vector<1x1x768xf32> to vector<1x768xf32>
    %40 = vector.broadcast %39 : vector<1x768xf32> to vector<16x768xf32>
    %41 = arith.addf %37, %40 : vector<16x768xf32>
    %c0_17 = arith.constant 0 : index
    %c0_18 = arith.constant 0 : index
    %c0_19 = arith.constant 0 : index
    %42 = vector.load %arg5[%c0_17, %c0_18, %c0_19] : memref<2x256x128xbf16, #tpu.memory_space<vmem>>, vector<1x256x128xbf16>
    %43 = vector.shape_cast %42 : vector<1x256x128xbf16> to vector<256x128xbf16>
    %44 = vector.extract_strided_slice %41 {offsets = [0, 0], sizes = [16, 128], strides = [1, 1]} : vector<16x768xf32> to vector<16x128xf32>
    %45 = vector.shape_cast %44 : vector<16x128xf32> to vector<2x8x128xf32>
    %46 = arith.truncf %45 : vector<2x8x128xf32> to vector<2x8x128xbf16>
    %47 = vector.extract_strided_slice %41 {offsets = [0, 256], sizes = [16, 128], strides = [1, 1]} : vector<16x768xf32> to vector<16x128xf32>
    %48 = vector.shape_cast %47 : vector<16x128xf32> to vector<2x8x128xf32>
    %49 = arith.truncf %48 : vector<2x8x128xf32> to vector<2x8x128xbf16>
    %50 = vector.extract_strided_slice %41 {offsets = [0, 512], sizes = [16, 128], strides = [1, 1]} : vector<16x768xf32> to vector<16x128xf32>
    %51 = vector.shape_cast %50 : vector<16x128xf32> to vector<2x8x128xf32>
    %52 = arith.truncf %51 : vector<2x8x128xf32> to vector<2x8x128xbf16>
    "tpu.trace_start"() <{level = 10 : i32, message = "bqd,bkd->bqk"}> : () -> ()
    %cst_20 = arith.constant dense<0.000000e+00> : vector<2x8x8xf32>
    %53 = tpu.matmul %46, %49, %cst_20 {dimension_numbers = #tpu.dot_dimension_numbers<[2], [2], [1], [1], [0, 0, 0, 1, 1, 1], [0], [0]>} : vector<2x8x128xbf16>, vector<2x8x128xbf16>, vector<2x8x8xf32> -> vector<2x8x8xf32>
    "tpu.trace_stop"() : () -> ()
    %54 = vector.broadcast %26 : vector<2x1x8xf32> to vector<2x8x8xf32>
    %55 = arith.addf %53, %54 : vector<2x8x8xf32>
    %cst_21 = arith.constant dense<0xFF800000> : vector<2x8xf32>
    %56 = vector.multi_reduction <maximumf>, %55, %cst_21 [2] : vector<2x8x8xf32> to vector<2x8xf32>
    %57 = vector.shape_cast %56 : vector<2x8xf32> to vector<2x8x1xf32>
    %58 = vector.broadcast %57 : vector<2x8x1xf32> to vector<2x8x8xf32>
    %59 = arith.subf %55, %58 : vector<2x8x8xf32>
    %60 = math.exp %59 : vector<2x8x8xf32>
    %cst_22 = arith.constant dense<0.000000e+00> : vector<2x8xf32>
    %61 = vector.multi_reduction <add>, %60, %cst_22 [2] : vector<2x8x8xf32> to vector<2x8xf32>
    %62 = vector.shape_cast %61 : vector<2x8xf32> to vector<2x8x1xf32>
    %63 = tpu.reciprocal %62 {approx = true} : vector<2x8x1xf32> -> vector<2x8x1xf32>
    %64 = vector.broadcast %63 : vector<2x8x1xf32> to vector<2x8x8xf32>
    %65 = arith.mulf %60, %64 : vector<2x8x8xf32>
    %66 = arith.truncf %65 : vector<2x8x8xf32> to vector<2x8x8xbf16>
    "tpu.trace_start"() <{level = 10 : i32, message = "bqk,bkd->bqd"}> : () -> ()
    %cst_23 = arith.constant dense<0.000000e+00> : vector<2x8x128xf32>
    %67 = tpu.matmul %66, %52, %cst_23 {dimension_numbers = #tpu.dot_dimension_numbers<[2], [1], [1], [2], [0, 0, 0, 1, 1, 2], [0], [0]>} : vector<2x8x8xbf16>, vector<2x8x128xbf16>, vector<2x8x128xf32> -> vector<2x8x128xf32>
    "tpu.trace_stop"() : () -> ()
    %68 = vector.shape_cast %67 : vector<2x8x128xf32> to vector<16x128xf32>
    %69 = arith.truncf %68 : vector<16x128xf32> to vector<16x128xbf16>
    %70 = vector.extract_strided_slice %43 {offsets = [0, 0], sizes = [128, 128], strides = [1, 1]} : vector<256x128xbf16> to vector<128x128xbf16>
    %cst_24 = arith.constant dense<0.000000e+00> : vector<16x128xf32>
    %71 = tpu.matmul %69, %70, %cst_24 {dimension_numbers = #tpu.dot_dimension_numbers<[1], [0], [0], [1], [0, 0, 1, 1], [], []>} : vector<16x128xbf16>, vector<128x128xbf16>, vector<16x128xf32> -> vector<16x128xf32>
    %72 = vector.extract_strided_slice %41 {offsets = [0, 128], sizes = [16, 128], strides = [1, 1]} : vector<16x768xf32> to vector<16x128xf32>
    %73 = vector.shape_cast %72 : vector<16x128xf32> to vector<2x8x128xf32>
    %74 = arith.truncf %73 : vector<2x8x128xf32> to vector<2x8x128xbf16>
    %75 = vector.extract_strided_slice %41 {offsets = [0, 384], sizes = [16, 128], strides = [1, 1]} : vector<16x768xf32> to vector<16x128xf32>
    %76 = vector.shape_cast %75 : vector<16x128xf32> to vector<2x8x128xf32>
    %77 = arith.truncf %76 : vector<2x8x128xf32> to vector<2x8x128xbf16>
    %78 = vector.extract_strided_slice %41 {offsets = [0, 640], sizes = [16, 128], strides = [1, 1]} : vector<16x768xf32> to vector<16x128xf32>
    %79 = vector.shape_cast %78 : vector<16x128xf32> to vector<2x8x128xf32>
    %80 = arith.truncf %79 : vector<2x8x128xf32> to vector<2x8x128xbf16>
    "tpu.trace_start"() <{level = 10 : i32, message = "bqd,bkd->bqk"}> : () -> ()
    %cst_25 = arith.constant dense<0.000000e+00> : vector<2x8x8xf32>
    %81 = tpu.matmul %74, %77, %cst_25 {dimension_numbers = #tpu.dot_dimension_numbers<[2], [2], [1], [1], [0, 0, 0, 1, 1, 1], [0], [0]>} : vector<2x8x128xbf16>, vector<2x8x128xbf16>, vector<2x8x8xf32> -> vector<2x8x8xf32>
    "tpu.trace_stop"() : () -> ()
    %82 = vector.broadcast %26 : vector<2x1x8xf32> to vector<2x8x8xf32>
    %83 = arith.addf %81, %82 : vector<2x8x8xf32>
    %cst_26 = arith.constant dense<0xFF800000> : vector<2x8xf32>
    %84 = vector.multi_reduction <maximumf>, %83, %cst_26 [2] : vector<2x8x8xf32> to vector<2x8xf32>
    %85 = vector.shape_cast %84 : vector<2x8xf32> to vector<2x8x1xf32>
    %86 = vector.broadcast %85 : vector<2x8x1xf32> to vector<2x8x8xf32>
    %87 = arith.subf %83, %86 : vector<2x8x8xf32>
    %88 = math.exp %87 : vector<2x8x8xf32>
    %cst_27 = arith.constant dense<0.000000e+00> : vector<2x8xf32>
    %89 = vector.multi_reduction <add>, %88, %cst_27 [2] : vector<2x8x8xf32> to vector<2x8xf32>
    %90 = vector.shape_cast %89 : vector<2x8xf32> to vector<2x8x1xf32>
    %91 = tpu.reciprocal %90 {approx = true} : vector<2x8x1xf32> -> vector<2x8x1xf32>
    %92 = vector.broadcast %91 : vector<2x8x1xf32> to vector<2x8x8xf32>
    %93 = arith.mulf %88, %92 : vector<2x8x8xf32>
    %94 = arith.truncf %93 : vector<2x8x8xf32> to vector<2x8x8xbf16>
    "tpu.trace_start"() <{level = 10 : i32, message = "bqk,bkd->bqd"}> : () -> ()
    %cst_28 = arith.constant dense<0.000000e+00> : vector<2x8x128xf32>
    %95 = tpu.matmul %94, %80, %cst_28 {dimension_numbers = #tpu.dot_dimension_numbers<[2], [1], [1], [2], [0, 0, 0, 1, 1, 2], [0], [0]>} : vector<2x8x8xbf16>, vector<2x8x128xbf16>, vector<2x8x128xf32> -> vector<2x8x128xf32>
    "tpu.trace_stop"() : () -> ()
    %96 = vector.shape_cast %95 : vector<2x8x128xf32> to vector<16x128xf32>
    %97 = arith.truncf %96 : vector<16x128xf32> to vector<16x128xbf16>
    %98 = vector.extract_strided_slice %43 {offsets = [128, 0], sizes = [128, 128], strides = [1, 1]} : vector<256x128xbf16> to vector<128x128xbf16>
    %cst_29 = arith.constant dense<0.000000e+00> : vector<16x128xf32>
    %99 = tpu.matmul %97, %98, %cst_29 {dimension_numbers = #tpu.dot_dimension_numbers<[1], [0], [0], [1], [0, 0, 1, 1], [], []>} : vector<16x128xbf16>, vector<128x128xbf16>, vector<16x128xf32> -> vector<16x128xf32>
    %100 = arith.addf %71, %99 : vector<16x128xf32>
    %101 = vector.broadcast %27 : vector<1x128xf32> to vector<16x128xf32>
    %102 = arith.addf %100, %101 : vector<16x128xf32>
    %103 = arith.addf %102, %25 : vector<16x128xf32>
    %cst_30 = arith.constant dense<0.000000e+00> : vector<16xf32>
    %104 = vector.multi_reduction <add>, %103, %cst_30 [1] : vector<16x128xf32> to vector<16xf32>
    %105 = vector.shape_cast %104 : vector<16xf32> to vector<16x1xf32>
    %106 = arith.mulf %103, %103 : vector<16x128xf32>
    %cst_31 = arith.constant dense<0.000000e+00> : vector<16xf32>
    %107 = vector.multi_reduction <add>, %106, %cst_31 [1] : vector<16x128xf32> to vector<16xf32>
    %108 = vector.shape_cast %107 : vector<16xf32> to vector<16x1xf32>
    %cst_32 = arith.constant 3.125000e-02 : f32
    %109 = vector.broadcast %cst_32 : f32 to vector<16x1xf32>
    %110 = arith.mulf %105, %109 : vector<16x1xf32>
    %cst_33 = arith.constant 3.125000e-02 : f32
    %111 = vector.broadcast %cst_33 : f32 to vector<16x1xf32>
    %112 = arith.mulf %108, %111 : vector<16x1xf32>
    %113 = arith.mulf %110, %110 : vector<16x1xf32>
    %114 = arith.subf %112, %113 : vector<16x1xf32>
    %115 = vector.broadcast %110 : vector<16x1xf32> to vector<16x128xf32>
    %116 = arith.subf %103, %115 : vector<16x128xf32>
    %cst_34 = arith.constant 9.99999996E-13 : f32
    %117 = vector.broadcast %cst_34 : f32 to vector<16x1xf32>
    %118 = arith.addf %114, %117 : vector<16x1xf32>
    %119 = math.rsqrt %118 : vector<16x1xf32>
    %120 = vector.broadcast %119 : vector<16x1xf32> to vector<16x128xf32>
    %121 = arith.mulf %116, %120 : vector<16x128xf32>
    %122 = vector.broadcast %28 : vector<1x128xf32> to vector<16x128xf32>
    %123 = arith.mulf %121, %122 : vector<16x128xf32>
    %124 = vector.broadcast %29 : vector<1x128xf32> to vector<16x128xf32>
    %125 = arith.addf %123, %124 : vector<16x128xf32>
    %126 = arith.truncf %125 : vector<16x128xf32> to vector<16x128xbf16>
    %c0_35 = arith.constant 0 : index
    %c0_36 = arith.constant 0 : index
    %c0_37 = arith.constant 0 : index
    %127 = vector.load %arg6[%c0_35, %c0_36, %c0_37] : memref<2x128x128xbf16, #tpu.memory_space<vmem>>, vector<1x128x128xbf16>
    %128 = vector.shape_cast %127 : vector<1x128x128xbf16> to vector<128x128xbf16>
    %cst_38 = arith.constant dense<0.000000e+00> : vector<16x128xf32>
    %129 = tpu.matmul %126, %128, %cst_38 {dimension_numbers = #tpu.dot_dimension_numbers<[1], [0], [0], [1], [0, 0, 1, 1], [], []>} : vector<16x128xbf16>, vector<128x128xbf16>, vector<16x128xf32> -> vector<16x128xf32>
    %130 = vector.broadcast %30 : vector<1x128xf32> to vector<16x128xf32>
    %131 = arith.addf %129, %130 : vector<16x128xf32>
    %132 = arith.mulf %131, %131 : vector<16x128xf32>
    %133 = arith.mulf %131, %132 : vector<16x128xf32>
    %cst_39 = arith.constant 4.471500e-02 : f32
    %134 = vector.broadcast %cst_39 : f32 to vector<16x128xf32>
    %135 = arith.mulf %134, %133 : vector<16x128xf32>
    %136 = arith.addf %131, %135 : vector<16x128xf32>
    %cst_40 = arith.constant 0.797884583 : f32
    %137 = vector.broadcast %cst_40 : f32 to vector<16x128xf32>
    %138 = arith.mulf %137, %136 : vector<16x128xf32>
    %139 = math.tanh %138 : vector<16x128xf32>
    %cst_41 = arith.constant 1.000000e+00 : f32
    %140 = vector.broadcast %cst_41 : f32 to vector<16x128xf32>
    %141 = arith.addf %140, %139 : vector<16x128xf32>
    %cst_42 = arith.constant 5.000000e-01 : f32
    %142 = vector.broadcast %cst_42 : f32 to vector<16x128xf32>
    %143 = arith.mulf %142, %141 : vector<16x128xf32>
    %144 = arith.mulf %131, %143 : vector<16x128xf32>
    %145 = arith.truncf %144 : vector<16x128xf32> to vector<16x128xbf16>
    %c0_43 = arith.constant 0 : index
    %c0_44 = arith.constant 0 : index
    %c0_45 = arith.constant 0 : index
    %146 = vector.load %arg7[%c0_43, %c0_44, %c0_45] : memref<2x128x128xbf16, #tpu.memory_space<vmem>>, vector<1x128x128xbf16>
    %147 = vector.shape_cast %146 : vector<1x128x128xbf16> to vector<128x128xbf16>
    %cst_46 = arith.constant dense<0.000000e+00> : vector<16x128xf32>
    %148 = tpu.matmul %145, %147, %cst_46 {dimension_numbers = #tpu.dot_dimension_numbers<[1], [0], [0], [1], [0, 0, 1, 1], [], []>} : vector<16x128xbf16>, vector<128x128xbf16>, vector<16x128xf32> -> vector<16x128xf32>
    %149 = vector.broadcast %31 : vector<1x128xf32> to vector<16x128xf32>
    %150 = arith.addf %148, %149 : vector<16x128xf32>
    %151 = arith.addf %150, %125 : vector<16x128xf32>
    %cst_47 = arith.constant dense<0.000000e+00> : vector<16xf32>
    %152 = vector.multi_reduction <add>, %151, %cst_47 [1] : vector<16x128xf32> to vector<16xf32>
    %153 = vector.shape_cast %152 : vector<16xf32> to vector<16x1xf32>
    %154 = arith.mulf %151, %151 : vector<16x128xf32>
    %cst_48 = arith.constant dense<0.000000e+00> : vector<16xf32>
    %155 = vector.multi_reduction <add>, %154, %cst_48 [1] : vector<16x128xf32> to vector<16xf32>
    %156 = vector.shape_cast %155 : vector<16xf32> to vector<16x1xf32>
    %cst_49 = arith.constant 3.125000e-02 : f32
    %157 = vector.broadcast %cst_49 : f32 to vector<16x1xf32>
    %158 = arith.mulf %153, %157 : vector<16x1xf32>
    %cst_50 = arith.constant 3.125000e-02 : f32
    %159 = vector.broadcast %cst_50 : f32 to vector<16x1xf32>
    %160 = arith.mulf %156, %159 : vector<16x1xf32>
    %161 = arith.mulf %158, %158 : vector<16x1xf32>
    %162 = arith.subf %160, %161 : vector<16x1xf32>
    %163 = vector.broadcast %158 : vector<16x1xf32> to vector<16x128xf32>
    %164 = arith.subf %151, %163 : vector<16x128xf32>
    %cst_51 = arith.constant 9.99999996E-13 : f32
    %165 = vector.broadcast %cst_51 : f32 to vector<16x1xf32>
    %166 = arith.addf %162, %165 : vector<16x1xf32>
    %167 = math.rsqrt %166 : vector<16x1xf32>
    %168 = vector.broadcast %167 : vector<16x1xf32> to vector<16x128xf32>
    %169 = arith.mulf %164, %168 : vector<16x128xf32>
    %170 = vector.broadcast %32 : vector<1x128xf32> to vector<16x128xf32>
    %171 = arith.mulf %169, %170 : vector<16x128xf32>
    %172 = vector.broadcast %33 : vector<1x128xf32> to vector<16x128xf32>
    %173 = arith.addf %171, %172 : vector<16x128xf32>
    %174 = vector.extract_strided_slice %0 {offsets = [11, 0], sizes = [1, 128], strides = [1, 1]} : vector<18x128xf32> to vector<1x128xf32>
    %175 = vector.extract_strided_slice %0 {offsets = [12, 0], sizes = [1, 128], strides = [1, 1]} : vector<18x128xf32> to vector<1x128xf32>
    %176 = vector.extract_strided_slice %0 {offsets = [13, 0], sizes = [1, 128], strides = [1, 1]} : vector<18x128xf32> to vector<1x128xf32>
    %177 = vector.extract_strided_slice %0 {offsets = [14, 0], sizes = [1, 128], strides = [1, 1]} : vector<18x128xf32> to vector<1x128xf32>
    %178 = vector.extract_strided_slice %0 {offsets = [15, 0], sizes = [1, 128], strides = [1, 1]} : vector<18x128xf32> to vector<1x128xf32>
    %179 = vector.extract_strided_slice %0 {offsets = [16, 0], sizes = [1, 128], strides = [1, 1]} : vector<18x128xf32> to vector<1x128xf32>
    %180 = vector.extract_strided_slice %0 {offsets = [17, 0], sizes = [1, 128], strides = [1, 1]} : vector<18x128xf32> to vector<1x128xf32>
    %181 = arith.truncf %173 : vector<16x128xf32> to vector<16x128xbf16>
    %c1 = arith.constant 1 : index
    %c0_52 = arith.constant 0 : index
    %c0_53 = arith.constant 0 : index
    %182 = vector.load %arg3[%c1, %c0_52, %c0_53] : memref<2x128x768xbf16, #tpu.memory_space<vmem>>, vector<1x128x768xbf16>
    %183 = vector.shape_cast %182 : vector<1x128x768xbf16> to vector<128x768xbf16>
    %cst_54 = arith.constant dense<0.000000e+00> : vector<16x768xf32>
    %184 = tpu.matmul %181, %183, %cst_54 {dimension_numbers = #tpu.dot_dimension_numbers<[1], [0], [0], [1], [0, 0, 1, 1], [], []>} : vector<16x128xbf16>, vector<128x768xbf16>, vector<16x768xf32> -> vector<16x768xf32>
    %c1_55 = arith.constant 1 : index
    %c0_56 = arith.constant 0 : index
    %c0_57 = arith.constant 0 : index
    %185 = vector.load %arg4[%c1_55, %c0_56, %c0_57] : memref<2x1x768xf32, #tpu.memory_space<vmem>>, vector<1x1x768xf32>
    %186 = vector.shape_cast %185 : vector<1x1x768xf32> to vector<1x768xf32>
    %187 = vector.broadcast %186 : vector<1x768xf32> to vector<16x768xf32>
    %188 = arith.addf %184, %187 : vector<16x768xf32>
    %c1_58 = arith.constant 1 : index
    %c0_59 = arith.constant 0 : index
    %c0_60 = arith.constant 0 : index
    %189 = vector.load %arg5[%c1_58, %c0_59, %c0_60] : memref<2x256x128xbf16, #tpu.memory_space<vmem>>, vector<1x256x128xbf16>
    %190 = vector.shape_cast %189 : vector<1x256x128xbf16> to vector<256x128xbf16>
    %191 = vector.extract_strided_slice %188 {offsets = [0, 0], sizes = [16, 128], strides = [1, 1]} : vector<16x768xf32> to vector<16x128xf32>
    %192 = vector.shape_cast %191 : vector<16x128xf32> to vector<2x8x128xf32>
    %193 = arith.truncf %192 : vector<2x8x128xf32> to vector<2x8x128xbf16>
    %194 = vector.extract_strided_slice %188 {offsets = [0, 256], sizes = [16, 128], strides = [1, 1]} : vector<16x768xf32> to vector<16x128xf32>
    %195 = vector.shape_cast %194 : vector<16x128xf32> to vector<2x8x128xf32>
    %196 = arith.truncf %195 : vector<2x8x128xf32> to vector<2x8x128xbf16>
    %197 = vector.extract_strided_slice %188 {offsets = [0, 512], sizes = [16, 128], strides = [1, 1]} : vector<16x768xf32> to vector<16x128xf32>
    %198 = vector.shape_cast %197 : vector<16x128xf32> to vector<2x8x128xf32>
    %199 = arith.truncf %198 : vector<2x8x128xf32> to vector<2x8x128xbf16>
    "tpu.trace_start"() <{level = 10 : i32, message = "bqd,bkd->bqk"}> : () -> ()
    %cst_61 = arith.constant dense<0.000000e+00> : vector<2x8x8xf32>
    %200 = tpu.matmul %193, %196, %cst_61 {dimension_numbers = #tpu.dot_dimension_numbers<[2], [2], [1], [1], [0, 0, 0, 1, 1, 1], [0], [0]>} : vector<2x8x128xbf16>, vector<2x8x128xbf16>, vector<2x8x8xf32> -> vector<2x8x8xf32>
    "tpu.trace_stop"() : () -> ()
    %201 = vector.broadcast %26 : vector<2x1x8xf32> to vector<2x8x8xf32>
    %202 = arith.addf %200, %201 : vector<2x8x8xf32>
    %cst_62 = arith.constant dense<0xFF800000> : vector<2x8xf32>
    %203 = vector.multi_reduction <maximumf>, %202, %cst_62 [2] : vector<2x8x8xf32> to vector<2x8xf32>
    %204 = vector.shape_cast %203 : vector<2x8xf32> to vector<2x8x1xf32>
    %205 = vector.broadcast %204 : vector<2x8x1xf32> to vector<2x8x8xf32>
    %206 = arith.subf %202, %205 : vector<2x8x8xf32>
    %207 = math.exp %206 : vector<2x8x8xf32>
    %cst_63 = arith.constant dense<0.000000e+00> : vector<2x8xf32>
    %208 = vector.multi_reduction <add>, %207, %cst_63 [2] : vector<2x8x8xf32> to vector<2x8xf32>
    %209 = vector.shape_cast %208 : vector<2x8xf32> to vector<2x8x1xf32>
    %210 = tpu.reciprocal %209 {approx = true} : vector<2x8x1xf32> -> vector<2x8x1xf32>
    %211 = vector.broadcast %210 : vector<2x8x1xf32> to vector<2x8x8xf32>
    %212 = arith.mulf %207, %211 : vector<2x8x8xf32>
    %213 = arith.truncf %212 : vector<2x8x8xf32> to vector<2x8x8xbf16>
    "tpu.trace_start"() <{level = 10 : i32, message = "bqk,bkd->bqd"}> : () -> ()
    %cst_64 = arith.constant dense<0.000000e+00> : vector<2x8x128xf32>
    %214 = tpu.matmul %213, %199, %cst_64 {dimension_numbers = #tpu.dot_dimension_numbers<[2], [1], [1], [2], [0, 0, 0, 1, 1, 2], [0], [0]>} : vector<2x8x8xbf16>, vector<2x8x128xbf16>, vector<2x8x128xf32> -> vector<2x8x128xf32>
    "tpu.trace_stop"() : () -> ()
    %215 = vector.shape_cast %214 : vector<2x8x128xf32> to vector<16x128xf32>
    %216 = arith.truncf %215 : vector<16x128xf32> to vector<16x128xbf16>
    %217 = vector.extract_strided_slice %190 {offsets = [0, 0], sizes = [128, 128], strides = [1, 1]} : vector<256x128xbf16> to vector<128x128xbf16>
    %cst_65 = arith.constant dense<0.000000e+00> : vector<16x128xf32>
    %218 = tpu.matmul %216, %217, %cst_65 {dimension_numbers = #tpu.dot_dimension_numbers<[1], [0], [0], [1], [0, 0, 1, 1], [], []>} : vector<16x128xbf16>, vector<128x128xbf16>, vector<16x128xf32> -> vector<16x128xf32>
    %219 = vector.extract_strided_slice %188 {offsets = [0, 128], sizes = [16, 128], strides = [1, 1]} : vector<16x768xf32> to vector<16x128xf32>
    %220 = vector.shape_cast %219 : vector<16x128xf32> to vector<2x8x128xf32>
    %221 = arith.truncf %220 : vector<2x8x128xf32> to vector<2x8x128xbf16>
    %222 = vector.extract_strided_slice %188 {offsets = [0, 384], sizes = [16, 128], strides = [1, 1]} : vector<16x768xf32> to vector<16x128xf32>
    %223 = vector.shape_cast %222 : vector<16x128xf32> to vector<2x8x128xf32>
    %224 = arith.truncf %223 : vector<2x8x128xf32> to vector<2x8x128xbf16>
    %225 = vector.extract_strided_slice %188 {offsets = [0, 640], sizes = [16, 128], strides = [1, 1]} : vector<16x768xf32> to vector<16x128xf32>
    %226 = vector.shape_cast %225 : vector<16x128xf32> to vector<2x8x128xf32>
    %227 = arith.truncf %226 : vector<2x8x128xf32> to vector<2x8x128xbf16>
    "tpu.trace_start"() <{level = 10 : i32, message = "bqd,bkd->bqk"}> : () -> ()
    %cst_66 = arith.constant dense<0.000000e+00> : vector<2x8x8xf32>
    %228 = tpu.matmul %221, %224, %cst_66 {dimension_numbers = #tpu.dot_dimension_numbers<[2], [2], [1], [1], [0, 0, 0, 1, 1, 1], [0], [0]>} : vector<2x8x128xbf16>, vector<2x8x128xbf16>, vector<2x8x8xf32> -> vector<2x8x8xf32>
    "tpu.trace_stop"() : () -> ()
    %229 = vector.broadcast %26 : vector<2x1x8xf32> to vector<2x8x8xf32>
    %230 = arith.addf %228, %229 : vector<2x8x8xf32>
    %cst_67 = arith.constant dense<0xFF800000> : vector<2x8xf32>
    %231 = vector.multi_reduction <maximumf>, %230, %cst_67 [2] : vector<2x8x8xf32> to vector<2x8xf32>
    %232 = vector.shape_cast %231 : vector<2x8xf32> to vector<2x8x1xf32>
    %233 = vector.broadcast %232 : vector<2x8x1xf32> to vector<2x8x8xf32>
    %234 = arith.subf %230, %233 : vector<2x8x8xf32>
    %235 = math.exp %234 : vector<2x8x8xf32>
    %cst_68 = arith.constant dense<0.000000e+00> : vector<2x8xf32>
    %236 = vector.multi_reduction <add>, %235, %cst_68 [2] : vector<2x8x8xf32> to vector<2x8xf32>
    %237 = vector.shape_cast %236 : vector<2x8xf32> to vector<2x8x1xf32>
    %238 = tpu.reciprocal %237 {approx = true} : vector<2x8x1xf32> -> vector<2x8x1xf32>
    %239 = vector.broadcast %238 : vector<2x8x1xf32> to vector<2x8x8xf32>
    %240 = arith.mulf %235, %239 : vector<2x8x8xf32>
    %241 = arith.truncf %240 : vector<2x8x8xf32> to vector<2x8x8xbf16>
    "tpu.trace_start"() <{level = 10 : i32, message = "bqk,bkd->bqd"}> : () -> ()
    %cst_69 = arith.constant dense<0.000000e+00> : vector<2x8x128xf32>
    %242 = tpu.matmul %241, %227, %cst_69 {dimension_numbers = #tpu.dot_dimension_numbers<[2], [1], [1], [2], [0, 0, 0, 1, 1, 2], [0], [0]>} : vector<2x8x8xbf16>, vector<2x8x128xbf16>, vector<2x8x128xf32> -> vector<2x8x128xf32>
    "tpu.trace_stop"() : () -> ()
    %243 = vector.shape_cast %242 : vector<2x8x128xf32> to vector<16x128xf32>
    %244 = arith.truncf %243 : vector<16x128xf32> to vector<16x128xbf16>
    %245 = vector.extract_strided_slice %190 {offsets = [128, 0], sizes = [128, 128], strides = [1, 1]} : vector<256x128xbf16> to vector<128x128xbf16>
    %cst_70 = arith.constant dense<0.000000e+00> : vector<16x128xf32>
    %246 = tpu.matmul %244, %245, %cst_70 {dimension_numbers = #tpu.dot_dimension_numbers<[1], [0], [0], [1], [0, 0, 1, 1], [], []>} : vector<16x128xbf16>, vector<128x128xbf16>, vector<16x128xf32> -> vector<16x128xf32>
    %247 = arith.addf %218, %246 : vector<16x128xf32>
    %248 = vector.broadcast %174 : vector<1x128xf32> to vector<16x128xf32>
    %249 = arith.addf %247, %248 : vector<16x128xf32>
    %250 = arith.addf %249, %173 : vector<16x128xf32>
    %cst_71 = arith.constant dense<0.000000e+00> : vector<16xf32>
    %251 = vector.multi_reduction <add>, %250, %cst_71 [1] : vector<16x128xf32> to vector<16xf32>
    %252 = vector.shape_cast %251 : vector<16xf32> to vector<16x1xf32>
    %253 = arith.mulf %250, %250 : vector<16x128xf32>
    %cst_72 = arith.constant dense<0.000000e+00> : vector<16xf32>
    %254 = vector.multi_reduction <add>, %253, %cst_72 [1] : vector<16x128xf32> to vector<16xf32>
    %255 = vector.shape_cast %254 : vector<16xf32> to vector<16x1xf32>
    %cst_73 = arith.constant 3.125000e-02 : f32
    %256 = vector.broadcast %cst_73 : f32 to vector<16x1xf32>
    %257 = arith.mulf %252, %256 : vector<16x1xf32>
    %cst_74 = arith.constant 3.125000e-02 : f32
    %258 = vector.broadcast %cst_74 : f32 to vector<16x1xf32>
    %259 = arith.mulf %255, %258 : vector<16x1xf32>
    %260 = arith.mulf %257, %257 : vector<16x1xf32>
    %261 = arith.subf %259, %260 : vector<16x1xf32>
    %262 = vector.broadcast %257 : vector<16x1xf32> to vector<16x128xf32>
    %263 = arith.subf %250, %262 : vector<16x128xf32>
    %cst_75 = arith.constant 9.99999996E-13 : f32
    %264 = vector.broadcast %cst_75 : f32 to vector<16x1xf32>
    %265 = arith.addf %261, %264 : vector<16x1xf32>
    %266 = math.rsqrt %265 : vector<16x1xf32>
    %267 = vector.broadcast %266 : vector<16x1xf32> to vector<16x128xf32>
    %268 = arith.mulf %263, %267 : vector<16x128xf32>
    %269 = vector.broadcast %175 : vector<1x128xf32> to vector<16x128xf32>
    %270 = arith.mulf %268, %269 : vector<16x128xf32>
    %271 = vector.broadcast %176 : vector<1x128xf32> to vector<16x128xf32>
    %272 = arith.addf %270, %271 : vector<16x128xf32>
    %273 = arith.truncf %272 : vector<16x128xf32> to vector<16x128xbf16>
    %c1_76 = arith.constant 1 : index
    %c0_77 = arith.constant 0 : index
    %c0_78 = arith.constant 0 : index
    %274 = vector.load %arg6[%c1_76, %c0_77, %c0_78] : memref<2x128x128xbf16, #tpu.memory_space<vmem>>, vector<1x128x128xbf16>
    %275 = vector.shape_cast %274 : vector<1x128x128xbf16> to vector<128x128xbf16>
    %cst_79 = arith.constant dense<0.000000e+00> : vector<16x128xf32>
    %276 = tpu.matmul %273, %275, %cst_79 {dimension_numbers = #tpu.dot_dimension_numbers<[1], [0], [0], [1], [0, 0, 1, 1], [], []>} : vector<16x128xbf16>, vector<128x128xbf16>, vector<16x128xf32> -> vector<16x128xf32>
    %277 = vector.broadcast %177 : vector<1x128xf32> to vector<16x128xf32>
    %278 = arith.addf %276, %277 : vector<16x128xf32>
    %279 = arith.mulf %278, %278 : vector<16x128xf32>
    %280 = arith.mulf %278, %279 : vector<16x128xf32>
    %cst_80 = arith.constant 4.471500e-02 : f32
    %281 = vector.broadcast %cst_80 : f32 to vector<16x128xf32>
    %282 = arith.mulf %281, %280 : vector<16x128xf32>
    %283 = arith.addf %278, %282 : vector<16x128xf32>
    %cst_81 = arith.constant 0.797884583 : f32
    %284 = vector.broadcast %cst_81 : f32 to vector<16x128xf32>
    %285 = arith.mulf %284, %283 : vector<16x128xf32>
    %286 = math.tanh %285 : vector<16x128xf32>
    %cst_82 = arith.constant 1.000000e+00 : f32
    %287 = vector.broadcast %cst_82 : f32 to vector<16x128xf32>
    %288 = arith.addf %287, %286 : vector<16x128xf32>
    %cst_83 = arith.constant 5.000000e-01 : f32
    %289 = vector.broadcast %cst_83 : f32 to vector<16x128xf32>
    %290 = arith.mulf %289, %288 : vector<16x128xf32>
    %291 = arith.mulf %278, %290 : vector<16x128xf32>
    %292 = arith.truncf %291 : vector<16x128xf32> to vector<16x128xbf16>
    %c1_84 = arith.constant 1 : index
    %c0_85 = arith.constant 0 : index
    %c0_86 = arith.constant 0 : index
    %293 = vector.load %arg7[%c1_84, %c0_85, %c0_86] : memref<2x128x128xbf16, #tpu.memory_space<vmem>>, vector<1x128x128xbf16>
    %294 = vector.shape_cast %293 : vector<1x128x128xbf16> to vector<128x128xbf16>
    %cst_87 = arith.constant dense<0.000000e+00> : vector<16x128xf32>
    %295 = tpu.matmul %292, %294, %cst_87 {dimension_numbers = #tpu.dot_dimension_numbers<[1], [0], [0], [1], [0, 0, 1, 1], [], []>} : vector<16x128xbf16>, vector<128x128xbf16>, vector<16x128xf32> -> vector<16x128xf32>
    %296 = vector.broadcast %178 : vector<1x128xf32> to vector<16x128xf32>
    %297 = arith.addf %295, %296 : vector<16x128xf32>
    %298 = arith.addf %297, %272 : vector<16x128xf32>
    %cst_88 = arith.constant dense<0.000000e+00> : vector<16xf32>
    %299 = vector.multi_reduction <add>, %298, %cst_88 [1] : vector<16x128xf32> to vector<16xf32>
    %300 = vector.shape_cast %299 : vector<16xf32> to vector<16x1xf32>
    %301 = arith.mulf %298, %298 : vector<16x128xf32>
    %cst_89 = arith.constant dense<0.000000e+00> : vector<16xf32>
    %302 = vector.multi_reduction <add>, %301, %cst_89 [1] : vector<16x128xf32> to vector<16xf32>
    %303 = vector.shape_cast %302 : vector<16xf32> to vector<16x1xf32>
    %cst_90 = arith.constant 3.125000e-02 : f32
    %304 = vector.broadcast %cst_90 : f32 to vector<16x1xf32>
    %305 = arith.mulf %300, %304 : vector<16x1xf32>
    %cst_91 = arith.constant 3.125000e-02 : f32
    %306 = vector.broadcast %cst_91 : f32 to vector<16x1xf32>
    %307 = arith.mulf %303, %306 : vector<16x1xf32>
    %308 = arith.mulf %305, %305 : vector<16x1xf32>
    %309 = arith.subf %307, %308 : vector<16x1xf32>
    %310 = vector.broadcast %305 : vector<16x1xf32> to vector<16x128xf32>
    %311 = arith.subf %298, %310 : vector<16x128xf32>
    %cst_92 = arith.constant 9.99999996E-13 : f32
    %312 = vector.broadcast %cst_92 : f32 to vector<16x1xf32>
    %313 = arith.addf %309, %312 : vector<16x1xf32>
    %314 = math.rsqrt %313 : vector<16x1xf32>
    %315 = vector.broadcast %314 : vector<16x1xf32> to vector<16x128xf32>
    %316 = arith.mulf %311, %315 : vector<16x128xf32>
    %317 = vector.broadcast %179 : vector<1x128xf32> to vector<16x128xf32>
    %318 = arith.mulf %316, %317 : vector<16x128xf32>
    %319 = vector.broadcast %180 : vector<1x128xf32> to vector<16x128xf32>
    %320 = arith.addf %318, %319 : vector<16x128xf32>
    %321 = vector.shape_cast %320 : vector<16x128xf32> to vector<2x8x128xf32>
    %322 = vector.extract_strided_slice %321 {offsets = [0, 0, 0], sizes = [2, 1, 128], strides = [1, 1, 1]} : vector<2x8x128xf32> to vector<2x1x128xf32>
    %323 = vector.shape_cast %322 : vector<2x1x128xf32> to vector<2x128xf32>
    %324 = arith.truncf %323 : vector<2x128xf32> to vector<2x128xbf16>
    %c0_93 = arith.constant 0 : index
    %c0_94 = arith.constant 0 : index
    %325 = vector.load %arg8[%c0_93, %c0_94] : memref<128x128xbf16, #tpu.memory_space<vmem>>, vector<128x128xbf16>
    %cst_95 = arith.constant dense<0.000000e+00> : vector<2x128xf32>
    %326 = tpu.matmul %324, %325, %cst_95 {dimension_numbers = #tpu.dot_dimension_numbers<[1], [0], [0], [1], [0, 0, 1, 1], [], []>} : vector<2x128xbf16>, vector<128x128xbf16>, vector<2x128xf32> -> vector<2x128xf32>
    %327 = vector.extract_strided_slice %0 {offsets = [2, 0], sizes = [1, 128], strides = [1, 1]} : vector<18x128xf32> to vector<1x128xf32>
    %328 = vector.broadcast %327 : vector<1x128xf32> to vector<2x128xf32>
    %329 = arith.addf %326, %328 : vector<2x128xf32>
    %330 = math.tanh %329 : vector<2x128xf32>
    %331 = arith.truncf %330 : vector<2x128xf32> to vector<2x128xbf16>
    %c0_96 = arith.constant 0 : index
    %c0_97 = arith.constant 0 : index
    %332 = vector.load %arg9[%c0_96, %c0_97] : memref<128x128xbf16, #tpu.memory_space<vmem>>, vector<128x128xbf16>
    %cst_98 = arith.constant dense<0.000000e+00> : vector<2x128xf32>
    %333 = tpu.matmul %331, %332, %cst_98 {dimension_numbers = #tpu.dot_dimension_numbers<[1], [0], [0], [1], [0, 0, 1, 1], [], []>} : vector<2x128xbf16>, vector<128x128xbf16>, vector<2x128xf32> -> vector<2x128xf32>
    %334 = vector.extract_strided_slice %0 {offsets = [3, 0], sizes = [1, 128], strides = [1, 1]} : vector<18x128xf32> to vector<1x128xf32>
    %335 = vector.broadcast %334 : vector<1x128xf32> to vector<2x128xf32>
    %336 = arith.addf %333, %335 : vector<2x128xf32>
    %c0_99 = arith.constant 0 : index
    %c0_100 = arith.constant 0 : index
    %337 = vector.load %arg10[%c0_99, %c0_100] : memref<2x128xf32, #tpu.memory_space<vmem>>, vector<2x128xf32>
    tpu.vector_store %arg10[%c0_99, %c0_100], %336 {strides = array<i32>} : memref<2x128xf32, #tpu.memory_space<vmem>>, vector<2x128xf32>,
    return
  }
}

</mosaic_0001>

<bundles_post_ra>
// kernel: tpu_custom_call.1
= control target key start
LH: loop header
LB: loop body
LE: loop exit
PB: predicated region body
PF: predicated region fallthrough
CT: control target
= control target key end

     0   :  { %15 = vsyncpa [#allocation3], 0  ;;  %s4015_s0 = inlined_call_operand.hbm [shape: f32[16,128], index: 0, kind: input, shape index: {}]   ;;  %s4016_s1 = inlined_call_operand.hbm [shape: f32[2,1,8], index: 1, kind: input, shape index: {}]   ;;  %s4017_s2 = inlined_call_operand.hbm [shape: f32[18,128], index: 2, kind: input, shape index: {}]   ;;  %s4018_s3 = inlined_call_operand.hbm [shape: bf16[2,128,768], index: 3, kind: input, shape index: {}]   ;;  %s4019_s4 = inlined_call_operand.hbm [shape: f32[2,1,768], index: 4, kind: input, shape index: {}]   ;;  %s4020_s5 = inlined_call_operand.hbm [shape: bf16[2,256,128], index: 5, kind: input, shape index: {}]   ;;  %s4021_s6 = inlined_call_operand.hbm [shape: bf16[2,128,128], index: 6, kind: input, shape index: {}]   ;;  %s4022_s7 = inlined_call_operand.hbm [shape: bf16[2,128,128], index: 7, kind: input, shape index: {}]   ;;  %s4023_s8 = inlined_call_operand.hbm [shape: bf16[128,128], index: 8, kind: input, shape index: {}]   ;;  %s4024_s9 = inlined_call_operand.hbm [shape: bf16[128,128], index: 9, kind: input, shape index: {}]   ;;  %s4025_s10 = inlined_call_operand.hbm [shape: f32[2,128], index: 10, kind: output, shape index: {}]  }
   0x1   :  { %16 = vsyncpa [#allocation6], 0 }
   0x2   :  { %17 = vsyncpa [#allocation9], 0 }
   0x3   :  { %18 = vsyncpa [#allocation12], 0 }
   0x4   :  { %19 = vsyncpa [#allocation15], 0 }
   0x5   :  { %20 = vsyncpa [#allocation18], 0  ;;  %s39_s15 = sshll.u32 %s4016_s1, 4  ;;  %s40_s15 = int_to_ptr.hbm [resolvable:$true] %s39_s15 }
   0x6   :  { %21 = vsyncpa [#allocation4], 0  ;;  %s3746_s16 = smov [#allocation5]   ;;  %s65_s20 = sshll.u32 %s4018_s3, 4  ;;  %s66_s20 = int_to_ptr.hbm [resolvable:$true] %s65_s20 }
   0x7   :  { %s41_s17 = sshll.u32 %s3746_s16, 4  ;;  %s3747_s21 = smov 16   ;;  %s42_s17 = int_to_ptr.vmem [resolvable:$true] %s41_s17 }
   0x8   :  { %s3748_s22 = smov 1   ;;  %s3749_s23 = smov [#allocation8]  }
   0x9   :  { %47 = dma.hbm_to_vmem [thread:$0]  %s40_s15, 32, %s42_s17, [#allocation6], %s3747_s21, %s3747_s21, %s3748_s22  }
   0xa   :  { %s67_s24 = sshll.u32 %s3749_s23, 4  ;;  %s3750_s25 = smov 384   ;;  %s68_s24 = int_to_ptr.vmem [resolvable:$true] %s67_s24 }
   0xb   :  { %s3751_s26 = smov 24   ;;  %s91_s28 = sshll.u32 %s4020_s5, 4  ;;  %s92_s28 = int_to_ptr.hbm [resolvable:$true] %s91_s28 }
   0xc   :  { %73 = dma.hbm_to_vmem [thread:$0]  %s66_s20, 12288, %s68_s24, [#allocation9], %s3750_s25, %s3750_s25, %s3751_s26  }
   0xd   :  { %s3752_s29 = smov [#allocation11]   ;;  %s117_s12 = sshll.u32 %s4022_s7, 4  ;;  %s118_s12 = int_to_ptr.hbm [resolvable:$true] %s117_s12 }
   0xe   :  { %s93_s30 = sshll.u32 %s3752_s29, 4  ;;  %s3753_s13 = smov 64   ;;  %s94_s30 = int_to_ptr.vmem [resolvable:$true] %s93_s30 }
   0xf   :  { %s3754_s14 = smov 4   ;;  %s3755_s15 = smov [#allocation14]  }
  0x10   :  { %99 = dma.hbm_to_vmem [thread:$0]  %s92_s28, 4096, %s94_s30, [#allocation12], %s3753_s13, %s3753_s13, %s3754_s14  }
  0x11   :  { %s119_s16 = sshll.u32 %s3755_s15, 4  ;;  %s26_s5 = sshll.u32 %s4015_s0, 4  ;;  %s120_s16 = int_to_ptr.vmem [resolvable:$true] %s119_s16  ;;  %s27_s5 = int_to_ptr.hbm [resolvable:$true] %s26_s5 }
  0x12   :  { %125 = dma.hbm_to_vmem [thread:$0]  %s118_s12, 2048, %s120_s16, [#allocation15], %s3753_s13, %s3753_s13, %s3754_s14  }
  0x13   :  { %s3756_s7 = smov [#allocation2]   ;;  %s52_s22 = sshll.u32 %s4017_s2, 4  ;;  %s53_s22 = int_to_ptr.hbm [resolvable:$true] %s52_s22 }
  0x14   :  { %s28_s19 = sshll.u32 %s3756_s7, 4  ;;  %s3757_s23 = smov 128   ;;  %s29_s19 = int_to_ptr.vmem [resolvable:$true] %s28_s19 }
  0x15   :  { %s3758_s24 = smov 8   ;;  %s3759_s25 = smov [#allocation7]  }
  0x16   :  { %34 = dma.hbm_to_vmem [thread:$0]  %s27_s5, 256, %s29_s19, [#allocation3], %s3757_s23, %s3757_s23, %s3758_s24  }
  0x17   :  { %s54_s26 = sshll.u32 %s3759_s25, 4  ;;  %s78_s27 = sshll.u32 %s4019_s4, 4  ;;  %s55_s26 = int_to_ptr.vmem [resolvable:$true] %s54_s26  ;;  %s79_s27 = int_to_ptr.hbm [resolvable:$true] %s78_s27 }
  0x18   :  { %60 = dma.hbm_to_vmem [thread:$0]  %s53_s22, 384, %s55_s26, [#allocation6], %s3757_s23, %s3757_s23, %s3758_s24  }
  0x19   :  { %s3760_s28 = smov [#allocation10]   ;;  %s104_s2 = sshll.u32 %s4021_s6, 4  ;;  %s105_s2 = int_to_ptr.hbm [resolvable:$true] %s104_s2 }
  0x1a   :  { %s80_s29 = sshll.u32 %s3760_s28, 4  ;;  %s3761_s3 = smov 96   ;;  %s81_s29 = int_to_ptr.vmem [resolvable:$true] %s80_s29 }
  0x1b   :  { %s3762_s12 = smov 6   ;;  %s3763_s15 = smov [#allocation13]  }
  0x1c   :  { %86 = dma.hbm_to_vmem [thread:$0]  %s79_s27, 192, %s81_s29, [#allocation9], %s3761_s3, %s3761_s3, %s3762_s12  }
  0x1d   :  { %s106_s16 = sshll.u32 %s3763_s15, 4  ;;  %s130_s4 = sshll.u32 %s4023_s8, 4  ;;  %s107_s16 = int_to_ptr.vmem [resolvable:$true] %s106_s16  ;;  %s131_s4 = int_to_ptr.hbm [resolvable:$true] %s130_s4 }
  0x1e   :  { %112 = dma.hbm_to_vmem [thread:$0]  %s105_s2, 2048, %s107_s16, [#allocation12], %s3753_s13, %s3753_s13, %s3754_s14  }
  0x1f   :  { %s143_s6 = sshll.u32 %s4024_s9, 4  ;;  %s3764_s19 = smov [#allocation16]   ;;  %s144_s6 = int_to_ptr.hbm [resolvable:$true] %s143_s6 }
  0x20   :  { %s132_s20 = sshll.u32 %s3764_s19, 4  ;;  %s3765_s21 = smov [#allocation17]   ;;  %s133_s20 = int_to_ptr.vmem [resolvable:$true] %s132_s20 }
  0x21   :  { %138 = dma.hbm_to_vmem [thread:$0]  %s131_s4, 1024, %s133_s20, [#allocation15], %s3753_s13, %s3753_s13, %s3754_s14  }
  0x22   :  { %s145_s8 = sshll.u32 %s3765_s21, 4  ;;  %s146_s8 = int_to_ptr.vmem [resolvable:$true] %s145_s8 }
  0x23   :  { %151 = dma.hbm_to_vmem [thread:$0]  %s144_s6, 1024, %s146_s8, [#allocation18], %s3753_s13, %s3753_s13, %s3754_s14  }
  0x24   :  { %3732 = dma.done.wait [#allocation3], 256  }
  0x25   :  { %3733 = vsyncadd [#allocation3], 4294967040 }
  0x26   :  { %3734 = dma.done.wait [#allocation6], 416  }
  0x27   :  { %3735 = vsyncadd [#allocation6], 4294966880 }
  0x28   :  { %3736 = dma.done.wait [#allocation9], 12480  }
  0x29   :  { %3737 = vsyncadd [#allocation9], 4294954816 }
  0x2a   :  { %3738 = dma.done.wait [#allocation12], 6144  }
  0x2b   :  { %3739 = vsyncadd [#allocation12], 4294961152 }
  0x2c   :  { %3740 = dma.done.wait [#allocation15], 3072  }
  0x2d   :  { %3741 = vsyncadd [#allocation15], 4294964224 }
  0x2e   :  { %3742 = dma.done.wait [#allocation18], 1024  }
  0x2f   :  { %3743 = vsyncadd [#allocation18], 4294966272  ;;  %v3867_v0 = vld [vmem:[#allocation2] sm:$0xff]  ;;  %v2661_v1 = vld [vmem:[#allocation8 + $0x150] sm:$0xf]  ;;  %vm735_vm6 = vcmask 1043456  }
  0x30   :  { %198 = vadd.xlane.f32.xlu0 %v3867_v0  ;;  %v202_v2 = vmul.f32 %v3867_v0, %v3867_v0  ;;  %v3248_v3 = vld [vmem:[#allocation8 + $0x164] sm:$0xf0]  ;;  %v3245_v4 = vld [vmem:[#allocation8 + $0x154] sm:$0xf]  ;;  %v2663_v5 = vld [vmem:[#allocation8 + $0x168] sm:$0xf0] }
  0x31   :  { %v2662_v6 = vor.u32 %v3248_v3, %v2661_v1  ;;  %v2666_v7 = vor.u32 %v3245_v4, %v2663_v5  ;;  %v3872_v8 = vld [vmem:[#allocation2 + $0x8] sm:$0xff]  ;;  %v3242_v11 = vld [vmem:[#allocation8 + $0x134] sm:$0xf0]  ;;  %v2613_v16 = vld [vmem:[#allocation8 + $0xf0] sm:$0xf]  ;;  %vm707_vm7 = vcmask 64512  }
  0x32   :  { %204 = vadd.xlane.f32.xlu1 %v202_v2  ;;  %v203_v9 = vmul.f32 %v3872_v8, %v3872_v8  ;;  %v2637_v10 = vld [vmem:[#allocation8 + $0x120] sm:$0xf]  ;;  %v3239_v12 = vld [vmem:[#allocation8 + $0x124] sm:$0xf]  ;;  %v2639_v14 = vld [vmem:[#allocation8 + $0x138] sm:$0xf0] }
  0x33   :  { %553 = vmatpush.bf16.msra.mxu0 %v2662_v6  ;;  %567 = vmatpush.bf16.msra.mxu1 %v2666_v7  ;;  %v2638_v13 = vor.u32 %v3242_v11, %v2637_v10  ;;  %v2642_v15 = vor.u32 %v3239_v12, %v2639_v14  ;;  %v3236_v17 = vld [vmem:[#allocation8 + $0x104] sm:$0xf0]  ;;  %v3233_v18 = vld [vmem:[#allocation8 + $0xf4] sm:$0xf]  ;;  %v2615_v20 = vld [vmem:[#allocation8 + $0x108] sm:$0xf0] }
  0x34   :  { %v2614_v19 = vor.u32 %v3236_v17, %v2613_v16  ;;  %v2618_v21 = vor.u32 %v3233_v18, %v2615_v20  ;;  %v2589_v22 = vld [vmem:[#allocation8 + $0xc0] sm:$0xf]  ;;  %v3230_v23 = vld [vmem:[#allocation8 + $0xd4] sm:$0xf0]  ;;  %v3227_v24 = vld [vmem:[#allocation8 + $0xc4] sm:$0xf] }
  0x35   :  { %v2590_v25 = vor.u32 %v3230_v23, %v2589_v22  ;;  %v2591_v26 = vld [vmem:[#allocation8 + $0xd8] sm:$0xf0]  ;;  %v2669_v27 = vld [vmem:[#allocation8 + $0x158] sm:$0xf]  ;;  %v3249_v28 = vld [vmem:[#allocation8 + $0x16c] sm:$0xf0] }
  0x36   :  { %v2594_v29 = vor.u32 %v3227_v24, %v2591_v26  ;;  %v2670_v30 = vor.u32 %v3249_v28, %v2669_v27  ;;  %v3246_v31 = vld [vmem:[#allocation8 + $0x15c] sm:$0xf]  ;;  %v2671_v32 = vld [vmem:[#allocation8 + $0x170] sm:$0xf0]  ;;  %v2565_v34 = vld [vmem:[#allocation8 + $0x90] sm:$0xf] }
  0x37   :  { %554 = vmatpush.bf16.msra.mxu0 %v2638_v13  ;;  %568 = vmatpush.bf16.msra.mxu1 %v2642_v15  ;;  %v2674_v33 = vor.u32 %v3246_v31, %v2671_v32  ;;  %v3224_v35 = vld [vmem:[#allocation8 + $0xa4] sm:$0xf0]  ;;  %v3221_v36 = vld [vmem:[#allocation8 + $0x94] sm:$0xf]  ;;  %v2567_v38 = vld [vmem:[#allocation8 + $0xa8] sm:$0xf0] }
  0x38   :  { %200 = vadd.xlane.f32.xlu0 %v3872_v8  ;;  %581 = vmatpush.bf16.msra.mxu2 %v2670_v30  ;;  %v2566_v37 = vor.u32 %v3224_v35, %v2565_v34  ;;  %v2645_v39 = vld [vmem:[#allocation8 + $0x128] sm:$0xf]  ;;  %v3243_v40 = vld [vmem:[#allocation8 + $0x13c] sm:$0xf0]  ;;  %v2570_v41 = vor.u32 %v3221_v36, %v2567_v38  ;;  %v3240_v43 = vld [vmem:[#allocation8 + $0x12c] sm:$0xf] }
  0x39   :  { %595 = vmatpush.bf16.msra.mxu3 %v2674_v33  ;;  %v2646_v42 = vor.u32 %v3243_v40, %v2645_v39  ;;  %v2647_v44 = vld [vmem:[#allocation8 + $0x140] sm:$0xf0]  ;;  %v2541_v46 = vld [vmem:[#allocation8 + $0x60] sm:$0xf]  ;;  %v3218_v47 = vld [vmem:[#allocation8 + $0x74] sm:$0xf0] }
  0x3a   :  { %206 = vadd.xlane.f32.xlu1 %v203_v9  ;;  %v2650_v45 = vor.u32 %v3240_v43, %v2647_v44  ;;  %v3215_v48 = vld [vmem:[#allocation8 + $0x64] sm:$0xf]  ;;  %v2542_v49 = vor.u32 %v3218_v47, %v2541_v46  ;;  %v2543_v50 = vld [vmem:[#allocation8 + $0x78] sm:$0xf0]  ;;  %v2621_v51 = vld [vmem:[#allocation8 + $0xf8] sm:$0xf] }
  0x3b   :  { %555 = vmatpush.bf16.msra.mxu0 %v2614_v19  ;;  %569 = vmatpush.bf16.msra.mxu1 %v2618_v21  ;;  %v3237_v52 = vld [vmem:[#allocation8 + $0x10c] sm:$0xf0]  ;;  %v2546_v53 = vor.u32 %v3215_v48, %v2543_v50  ;;  %v3234_v55 = vld [vmem:[#allocation8 + $0xfc] sm:$0xf]  ;;  %v2623_v56 = vld [vmem:[#allocation8 + $0x110] sm:$0xf0] }
  0x3c   :  { %582 = vmatpush.bf16.msra.mxu2 %v2646_v42  ;;  %v2622_v54 = vor.u32 %v3237_v52, %v2621_v51  ;;  %v2626_v57 = vor.u32 %v3234_v55, %v2623_v56  ;;  %v2517_v58 = vld [vmem:[#allocation8 + $0x30] sm:$0xf]  ;;  %v3212_v59 = vld [vmem:[#allocation8 + $0x44] sm:$0xf0]  ;;  %v3209_v60 = vld [vmem:[#allocation8 + $0x34] sm:$0xf] }
  0x3d   :  { %596 = vmatpush.bf16.msra.mxu3 %v2650_v45  ;;  %v2518_v61 = vor.u32 %v3212_v59, %v2517_v58  ;;  %v2519_v62 = vld [vmem:[#allocation8 + $0x48] sm:$0xf0]  ;;  %v2597_v63 = vld [vmem:[#allocation8 + $0xc8] sm:$0xf]  ;;  %v3231_v1 = vld [vmem:[#allocation8 + $0xdc] sm:$0xf0] }
  0x3e   :  { %v2522_v2 = vor.u32 %v3209_v60, %v2519_v62  ;;  %v2598_v3 = vor.u32 %v3231_v1, %v2597_v63  ;;  %v3228_v4 = vld [vmem:[#allocation8 + $0xcc] sm:$0xf]  ;;  %v2599_v5 = vld [vmem:[#allocation8 + $0xe0] sm:$0xf0]  ;;  %v2493_v7 = vld [vmem:[#allocation8] sm:$0xf] }
  0x3f   :  { %556 = vmatpush.bf16.msra.mxu0 %v2590_v25  ;;  %570 = vmatpush.bf16.msra.mxu1 %v2594_v29  ;;  %v2602_v6 = vor.u32 %v3228_v4, %v2599_v5  ;;  %v3206_v9 = vld [vmem:[#allocation8 + $0x14] sm:$0xf0]  ;;  %v3203_v10 = vld [vmem:[#allocation8 + $0x4] sm:$0xf]  ;;  %v2495_v12 = vld [vmem:[#allocation8 + $0x18] sm:$0xf0] }
  0x40   :  { %583 = vmatpush.bf16.msra.mxu2 %v2622_v54  ;;  %v2494_v11 = vor.u32 %v3206_v9, %v2493_v7  ;;  %v2573_v13 = vld [vmem:[#allocation8 + $0x98] sm:$0xf]  ;;  %v3225_v14 = vld [vmem:[#allocation8 + $0xac] sm:$0xf0]  ;;  %v2498_v15 = vor.u32 %v3203_v10, %v2495_v12  ;;  %v3222_v17 = vld [vmem:[#allocation8 + $0x9c] sm:$0xf] }
  0x41   :  { %597 = vmatpush.bf16.msra.mxu3 %v2626_v57  ;;  %v2574_v16 = vor.u32 %v3225_v14, %v2573_v13  ;;  %v2575_v18 = vld [vmem:[#allocation8 + $0xb0] sm:$0xf0]  ;;  %v2677_v19 = vld [vmem:[#allocation8 + $0x160] sm:$0xf]  ;;  %v3250_v21 = vld [vmem:[#allocation8 + $0x174] sm:$0xf0] }
  0x42   :  { %v2578_v20 = vor.u32 %v3222_v17, %v2575_v18  ;;  %v3247_v22 = vld [vmem:[#allocation8 + $0x164] sm:$0xf]  ;;  %v2678_v23 = vor.u32 %v3250_v21, %v2677_v19  ;;  %v2679_v24 = vld [vmem:[#allocation8 + $0x178] sm:$0xf0]  ;;  %v2549_v26 = vld [vmem:[#allocation8 + $0x68] sm:$0xf] }
  0x43   :  { %557 = vmatpush.bf16.msra.mxu0 %v2566_v37  ;;  %571 = vmatpush.bf16.msra.mxu1 %v2570_v41  ;;  %v2682_v25 = vor.u32 %v3247_v22, %v2679_v24  ;;  %v3219_v27 = vld [vmem:[#allocation8 + $0x7c] sm:$0xf0]  ;;  %v3216_v29 = vld [vmem:[#allocation8 + $0x6c] sm:$0xf]  ;;  %v2551_v30 = vld [vmem:[#allocation8 + $0x80] sm:$0xf0] }
  0x44   :  { %584 = vmatpush.bf16.msra.mxu2 %v2598_v3  ;;  %v2550_v28 = vor.u32 %v3219_v27, %v2549_v26  ;;  %v2653_v31 = vld [vmem:[#allocation8 + $0x130] sm:$0xf]  ;;  %v2554_v32 = vor.u32 %v3216_v29, %v2551_v30  ;;  %v3244_v33 = vld [vmem:[#allocation8 + $0x144] sm:$0xf0]  ;;  %v3241_v34 = vld [vmem:[#allocation8 + $0x134] sm:$0xf] }
  0x45   :  { %598 = vmatpush.bf16.msra.mxu3 %v2602_v6  ;;  %v2655_v35 = vld [vmem:[#allocation8 + $0x148] sm:$0xf0]  ;;  %v2654_v37 = vor.u32 %v3244_v33, %v2653_v31  ;;  %v2525_v40 = vld [vmem:[#allocation8 + $0x38] sm:$0xf]  ;;  %v3213_v41 = vld [vmem:[#allocation8 + $0x4c] sm:$0xf0] }
  0x46   :  { %v2658_v38 = vor.u32 %v3241_v34, %v2655_v35  ;;  %v2526_v43 = vor.u32 %v3213_v41, %v2525_v40  ;;  %v3210_v44 = vld [vmem:[#allocation8 + $0x3c] sm:$0xf]  ;;  %v2527_v45 = vld [vmem:[#allocation8 + $0x50] sm:$0xf0]  ;;  %v2629_v46 = vld [vmem:[#allocation8 + $0x100] sm:$0xf] }
  0x47   :  { %558 = vmatpush.bf16.msra.mxu0 %v2542_v49  ;;  %572 = vmatpush.bf16.msra.mxu1 %v2546_v53  ;;  %v2530_v49 = vor.u32 %v3210_v44, %v2527_v45  ;;  %v3238_v50 = vld [vmem:[#allocation8 + $0x114] sm:$0xf0]  ;;  %v3235_v51 = vld [vmem:[#allocation8 + $0x104] sm:$0xf]  ;;  %v2631_v53 = vld [vmem:[#allocation8 + $0x118] sm:$0xf0] }
  0x48   :  { %585 = vmatpush.bf16.msra.mxu2 %v2574_v16  ;;  %v2630_v52 = vor.u32 %v3238_v50, %v2629_v46  ;;  %v2634_v55 = vor.u32 %v3235_v51, %v2631_v53  ;;  %v2501_v56 = vld [vmem:[#allocation8 + $0x8] sm:$0xf]  ;;  %v3207_v57 = vld [vmem:[#allocation8 + $0x1c] sm:$0xf0]  ;;  %v3204_v58 = vld [vmem:[#allocation8 + $0xc] sm:$0xf] }
  0x49   :  { %599 = vmatpush.bf16.msra.mxu3 %v2578_v20  ;;  %v2502_v59 = vor.u32 %v3207_v57, %v2501_v56  ;;  %v2503_v60 = vld [vmem:[#allocation8 + $0x20] sm:$0xf0]  ;;  %v3232_v62 = vld [vmem:[#allocation8 + $0xe4] sm:$0xf0]  ;;  %v3229_v3 = vld [vmem:[#allocation8 + $0xd4] sm:$0xf] }
  0x4a   :  { %v2506_v1 = vor.u32 %v3204_v58, %v2503_v60  ;;  %v2607_v4 = vld [vmem:[#allocation8 + $0xe8] sm:$0xf0]  ;;  %v2581_v10 = vld [vmem:[#allocation8 + $0xa0] sm:$0xf]  ;;  %v3223_v12 = vld [vmem:[#allocation8 + $0xa4] sm:$0xf] }
  0x4b   :  { %559 = vmatpush.bf16.msra.mxu0 %v2518_v61  ;;  %573 = vmatpush.bf16.msra.mxu1 %v2522_v2  ;;  %v2605_v61 = vld [vmem:[#allocation8 + $0xd0] sm:$0xf]  ;;  %v2610_v6 = vor.u32 %v3229_v3, %v2607_v4  ;;  %v2583_v16 = vld [vmem:[#allocation8 + $0xb8] sm:$0xf0]  ;;  %v3220_v19 = vld [vmem:[#allocation8 + $0x84] sm:$0xf0] }
  0x4c   :  { %586 = vmatpush.bf16.msra.mxu2 %v2550_v28  ;;  %v2606_v2 = vor.u32 %v3232_v62, %v2605_v61  ;;  %v2586_v17 = vor.u32 %v3223_v12, %v2583_v16  ;;  %v2557_v18 = vld [vmem:[#allocation8 + $0x70] sm:$0xf]  ;;  %v3217_v20 = vld [vmem:[#allocation8 + $0x74] sm:$0xf]  ;;  %v2559_v22 = vld [vmem:[#allocation8 + $0x88] sm:$0xf0] }
  0x4d   :  { %600 = vmatpush.bf16.msra.mxu3 %v2554_v32  ;;  %v2562_v26 = vor.u32 %v3217_v20, %v2559_v22  ;;  %v2533_v27 = vld [vmem:[#allocation8 + $0x40] sm:$0xf]  ;;  %v3214_v28 = vld [vmem:[#allocation8 + $0x54] sm:$0xf0]  ;;  %v3211_v30 = vld [vmem:[#allocation8 + $0x44] sm:$0xf] }
  0x4e   :  { %v2535_v31 = vld [vmem:[#allocation8 + $0x58] sm:$0xf0]  ;;  %v2534_v33 = vor.u32 %v3214_v28, %v2533_v27  ;;  %v2509_v35 = vld [vmem:[#allocation8 + $0x10] sm:$0xf]  ;;  %v2511_v40 = vld [vmem:[#allocation8 + $0x28] sm:$0xf0] }
  0x4f   :  { %560 = vmatpush.bf16.msra.mxu0 %v2494_v11  ;;  %574 = vmatpush.bf16.msra.mxu1 %v2498_v15  ;;  %v3226_v11 = vld [vmem:[#allocation8 + $0xb4] sm:$0xf0]  ;;  %v2538_v34 = vor.u32 %v3211_v30, %v2535_v31  ;;  %v3907_v31 = vld [vmem:[#allocation5] ss:$0 sm:$0xff]  ;;  %s3766_s9 = smov [#allocation19]   ;;  %s2476_s23 = sshll.u32 %s4025_s10, 4  ;;  %s2477_s23 = int_to_ptr.hbm [resolvable:$true] %s2476_s23 }
  0x50   :  { %587 = vmatpush.bf16.msra.mxu2 %v2526_v43  ;;  %v2582_v15 = vor.u32 %v3226_v11, %v2581_v10  ;;  %s2474_s13 = sshll.u32 %s3766_s9, 4  ;;  %s2475_s13 = int_to_ptr.vmem [resolvable:$true] %s2474_s13 }
  0x51   :  { %601 = vmatpush.bf16.msra.mxu3 %v2530_v49 }
  0x53   :  { %609 = vmatpush.bf16.msrb.mxu0 %v2678_v23  ;;  %623 = vmatpush.bf16.msrb.mxu1 %v2682_v25  ;;  %v2558_v23 = vor.u32 %v3220_v19, %v2557_v18 }
  0x54   :  { %588 = vmatpush.bf16.msra.mxu2 %v2502_v59 }
  0x55   :  { %602 = vmatpush.bf16.msra.mxu3 %v2506_v1 }
  0x57   :  { %610 = vmatpush.bf16.msrb.mxu0 %v2654_v37  ;;  %624 = vmatpush.bf16.msrb.mxu1 %v2658_v38  ;;  %v3205_v38 = vld [vmem:[#allocation8 + $0x14] sm:$0xf] }
  0x58   :  { %v2514_v44 = vor.u32 %v3205_v38, %v2511_v40 }
  0x5b   :  { %611 = vmatpush.bf16.msrb.mxu0 %v2630_v52  ;;  %625 = vmatpush.bf16.msrb.mxu1 %v2634_v55 }
  0x5f   :  { %612 = vmatpush.bf16.msrb.mxu0 %v2606_v2  ;;  %626 = vmatpush.bf16.msrb.mxu1 %v2610_v6 }
  0x63   :  { %613 = vmatpush.bf16.msrb.mxu0 %v2582_v15  ;;  %627 = vmatpush.bf16.msrb.mxu1 %v2586_v17 }
  0x67   :  { %614 = vmatpush.bf16.msrb.mxu0 %v2558_v23  ;;  %628 = vmatpush.bf16.msrb.mxu1 %v2562_v26 }
  0x6b   :  { %615 = vmatpush.bf16.msrb.mxu0 %v2534_v33  ;;  %629 = vmatpush.bf16.msrb.mxu1 %v2538_v34 }
  0x6f   :  { %630 = vmatpush.bf16.msrb.mxu1 %v2514_v44 }
  0xa3   :  { %v199_v36 = vpop.xlane.xlu0 %198 }
  0xa4   :  { %v3877_v39 = vmul.f32 0.03125, %v199_v36  ;;  %v3208_v36 = vld [vmem:[#allocation8 + $0x24] sm:$0xf0] }
  0xa5   :  { %v205_v42 = vpop.xlane.xlu1 %204 }
  0xa6   :  { %v212_v47 = vmul.f32 %v3877_v39, %v3877_v39  ;;  %v210_v48 = vmul.f32 0.03125, %v205_v42  ;;  %v2510_v42 = vor.u32 %v3208_v36, %v2509_v35  ;;  %v216_v51 = vsub.f32 %v3867_v0, %v3877_v39  ;;  %v3911_v35 = vld [vmem:[#allocation5 + $0x1] ss:$0 sm:$0xff] }
  0xa8   :  { %v214_v54 = vsub.f32 %v210_v48, %v212_v47  ;;  %616 = vmatpush.bf16.msrb.mxu0 %v2510_v42  ;;  %v3885_v48 = vld [vmem:[#allocation7] sm:$0xff] }
  0xa9   :  { %v245_v59 = vperm.slane %v3885_v48, 1 }
  0xaa   :  { %v218_v63 = vadd.f32 1e-12, %v214_v54  ;;  %v242_v54 = vperm.slane %v3885_v48, 0 }
  0xab   :  { %v201_v5 = vpop.xlane.xlu0 %200 }
  0xac   :  { %3402 = vrsqrt.f32 %v218_v63  ;;  %v3881_v7 = vmul.f32 0.03125, %v201_v5  ;;  %vm226_vm1 = vweird.f32 %v218_v63 }
  0xad   :  { %v207_v9 = vpop.xlane.xlu1 %206 }
  0xae   :  { %v213_v13 = vmul.f32 %v3881_v7, %v3881_v7  ;;  %v211_v14 = vmul.f32 0.03125, %v207_v9  ;;  %v217_v56 = vsub.f32 %v3872_v8, %v3881_v7 }
  0xb0   :  { %v215_v21 = vsub.f32 %v211_v14, %v213_v13 }
  0xb2   :  { %v3403_v24 = vpop.eup %3402  ;;  %v219_v25 = vadd.f32 1e-12, %v215_v21 }
  0xb3   :  { %v221_v29 = vmul.f32 %v3403_v24, %v218_v63  ;;  %vm227_vm0 = vweird.f32 %v3403_v24  ;;  %v3899_v63 = vld [vmem:[#allocation10] sm:$0x3f] }
  0xb4   :  { %3404 = vrsqrt.f32 %v219_v25  ;;  %vm228_vm2 = vmor %vm226_vm1, %vm227_vm0  ;;  %vm236_vm4 = vweird.f32 %v219_v25  ;;  %v303_v1 = vperm.slane %v3899_v63, 2  ;;  %v301_v5 = vperm.slane %v3899_v63, 0 }
  0xb5   :  { %v222_v32 = vmul.f32 %v3403_v24, %v221_v29  ;;  %v304_v10 = vperm.slane %v3899_v63, 3  ;;  %v305_v11 = vperm.slane %v3899_v63, 4 }
  0xb7   :  { %v223_v37 = vmul.f32 0.5, %v222_v32 }
  0xb9   :  { %v224_v41 = vsub.f32 1.5, %v223_v37 }
  0xba   :  { %v3405_v43 = vpop.eup %3404 }
  0xbb   :  { %v225_v45 = vmul.f32 %v3403_v24, %v224_v41  ;;  %v231_v46 = vmul.f32 %v3405_v43, %v219_v25  ;;  %vm237_vm3 = vweird.f32 %v3405_v43 }
  0xbc   :  { %vm238_vm5 = vmor %vm236_vm4, %vm237_vm3 }
  0xbd   :  { %v232_v47 = vmul.f32 %v3405_v43, %v231_v46  ;;  %v229_v49 = vsel %vm228_vm2, %v3403_v24, %v225_v45 }
  0xbe   :  { %v240_v53 = vmul.f32 %v229_v49, %v216_v51 }
  0xbf   :  { %v233_v50 = vmul.f32 0.5, %v232_v47 }
  0xc0   :  { %v243_v58 = vmul.f32 %v242_v54, %v240_v53 }
  0xc1   :  { %v234_v52 = vsub.f32 1.5, %v233_v50 }
  0xc2   :  { %v3893_v62 = vadd.f32 %v245_v59, %v243_v58 }
  0xc3   :  { %v235_v55 = vmul.f32 %v3405_v43, %v234_v52 }
  0xc5   :  { %v239_v57 = vsel %vm238_vm5, %v3405_v43, %v235_v55 }
  0xc6   :  { %v241_v60 = vmul.f32 %v239_v57, %v217_v56  ;;  %v306_v56 = vperm.slane %v3899_v63, 5 }
  0xc8   :  { %v244_v61 = vmul.f32 %v242_v54, %v241_v60  ;;  %v3257_v60 = vld [vmem:[#allocation11 + $0x30] sm:$0xff] }
  0xca   :  { %v3895_v0 = vadd.f32 %v245_v59, %v244_v61  ;;  %v3258_v59 = vld [vmem:[#allocation11 + $0x38] sm:$0xff] }
  0xcc   :  { %v250_v39 = vpack.c.bf16 %v3895_v0, %v3893_v62 }
  0xce   :  { %561 = vmatmul.bf16.vlgmr.msra.gmra.mxu0 %v250_v39  ;;  %575 = vmatmul.bf16.vlgmr.msra.gmra.mxu1 %v250_v39 }
  0xcf   :  { %589 = vmatmul.bf16.vlgmr.msra.gmra.mxu2 %v250_v39  ;;  %603 = vmatmul.bf16.vlgmr.msra.gmra.mxu3 %v250_v39 }
  0xd0   :  { %977 = vmatpush.bf16.msra.mxu1 %v3258_v59 }
  0xd4   :  { %978 = vmatpush.bf16.msra.mxu1 %v3257_v60  ;;  %v3261_v60 = vld [vmem:[#allocation11 + $0x50] sm:$0xff] }
  0xde   :  { %617 = vmatmul.bf16.vlgmr.msrb.gmra.mxu0 %v250_v39  ;;  %631 = vmatmul.bf16.vlgmr.msrb.gmra.mxu1 %v250_v39 }
 0x14b   :  { %v562_v8 = vpop.f32.mrf.mxu0  ;;  %v576_v53 = vpop.f32.mrf.mxu1 }
 0x14c   :  { %v563_v9 = vadd.f32 %v562_v8, %v301_v5 }
 0x14e   :  { %v669_v15 = vpack.c.bf16 %v563_v9, %v563_v9 }
 0x152   :  { %v590_v2 = vpop.f32.mrf.mxu2  ;;  %v604_v7 = vpop.f32.mrf.mxu3 }
 0x153   :  { %v591_v3 = vadd.f32 %v590_v2, %v303_v1  ;;  %v564_v4 = vpop.f32.mrf.mxu0  ;;  %v605_v16 = vadd.f32 %v604_v7, %v304_v10  ;;  %v578_v54 = vpop.f32.mrf.mxu1  ;;  %v3255_v7 = vld [vmem:[#allocation11 + $0x20] sm:$0xff] }
 0x154   :  { %v565_v21 = vadd.f32 %v564_v4, %v301_v5  ;;  %v3256_v4 = vld [vmem:[#allocation11 + $0x28] sm:$0xff] }
 0x155   :  { %v671_v6 = vpack.c.bf16 %v591_v3, %v591_v3  ;;  %v774_v20 = vpack.c.bf16 %v605_v16, %v605_v16  ;;  %979 = vmatpush.bf16.msra.mxu1 %v3256_v4 }
 0x156   :  { %v670_v25 = vpack.c.bf16 %v565_v21, %v565_v21  ;;  %v3252_v21 = vld [vmem:[#allocation11 + $0x8] sm:$0xff] }
 0x157   :  { %688 = vmatpush.bf16.xpose.msrb.mxu2 %v671_v6 }
 0x159   :  { %980 = vmatpush.bf16.msra.mxu1 %v3255_v7 }
 0x15a   :  { %v592_v12 = vpop.f32.mrf.mxu2  ;;  %v606_v23 = vpop.f32.mrf.mxu3 }
 0x15b   :  { %v593_v13 = vadd.f32 %v592_v12, %v303_v1  ;;  %v618_v14 = vpop.f32.mrf.mxu0  ;;  %v607_v26 = vadd.f32 %v606_v23, %v304_v10  ;;  %v632_v55 = vpop.f32.mrf.mxu1  ;;  %v302_v12 = vperm.slane %v3899_v63, 1  ;;  %v3251_v63 = vld [vmem:[#allocation11] sm:$0xff] }
 0x15c   :  { %v619_v17 = vadd.f32 %v618_v14, %v305_v11  ;;  %v633_v58 = vadd.f32 %v632_v55, %v306_v56  ;;  %v3254_v14 = vld [vmem:[#allocation11 + $0x18] sm:$0xff] }
 0x15d   :  { %v672_v18 = vpack.c.bf16 %v593_v13, %v593_v13  ;;  %v775_v29 = vpack.c.bf16 %v607_v26, %v607_v26  ;;  %v577_v16 = vadd.f32 %v576_v53, %v302_v12  ;;  %981 = vmatpush.bf16.msra.mxu1 %v3254_v14 }
 0x15e   :  { %v673_v19 = vpack.c.bf16 %v619_v17, %v619_v17  ;;  %689 = vmatmul.bf16.vlgmr.msrb.gmra.mxu2 %v669_v15  ;;  %v776_v39 = vpack.c.bf16 %v633_v58, %v633_v58 }
 0x15f   :  { %701 = vmatpush.bf16.xpose.msrb.mxu3 %v672_v18  ;;  %v772_v17 = vpack.c.bf16 %v577_v16, %v577_v16  ;;  %v579_v18 = vadd.f32 %v578_v54, %v302_v12 }
 0x160   :  { %v737_v22 = vsel %vm735_vm6, %v673_v19, 0  ;;  %v832_v5 = vsel %vm735_vm6, %v776_v39, 0  ;;  %v3259_v39 = vld [vmem:[#allocation11 + $0x40] sm:$0xff] }
 0x161   :  { %746 = vmatpush.bf16.msra.mxu2 %v737_v22  ;;  %v773_v19 = vpack.c.bf16 %v579_v18, %v579_v18 }
 0x163   :  { %v620_v24 = vpop.f32.mrf.mxu0  ;;  %v634_v2 = vpop.f32.mrf.mxu1 }
 0x164   :  { %v621_v27 = vadd.f32 %v620_v24, %v305_v11  ;;  %v635_v6 = vadd.f32 %v634_v2, %v306_v56 }
 0x165   :  { %785 = vmatpush.bf16.xpose.msrb.mxu2 %v774_v20  ;;  %v3253_v20 = vld [vmem:[#allocation11 + $0x10] sm:$0xff] }
 0x166   :  { %v674_v28 = vpack.c.bf16 %v621_v27, %v621_v27  ;;  %702 = vmatmul.bf16.vlgmr.msrb.gmra.mxu3 %v670_v25  ;;  %v777_v10 = vpack.c.bf16 %v635_v6, %v635_v6  ;;  %982 = vmatpush.bf16.msra.mxu1 %v3253_v20  ;;  %v991_v6 = vperm.slane %v3885_v48, 4  ;;  %v3273_v20 = vld [vmem:[#allocation13 + $0x30] sm:$0xff] }
 0x168   :  { %v756_v30 = vsel %vm735_vm6, %v674_v28, 0  ;;  %v851_v15 = vsel %vm735_vm6, %v777_v10, 0 }
 0x169   :  { %765 = vmatpush.bf16.msra.mxu3 %v756_v30 }
 0x16a   :  { %983 = vmatpush.bf16.msra.mxu1 %v3252_v21  ;;  %v3272_v21 = vld [vmem:[#allocation13 + $0x28] sm:$0xff] }
 0x16d   :  { %798 = vmatpush.bf16.xpose.msrb.mxu3 %v775_v29 }
 0x16e   :  { %984 = vmatpush.bf16.msra.mxu1 %v3251_v63  ;;  %v3271_v63 = vld [vmem:[#allocation13 + $0x20] sm:$0xff] }
 0x1e1   :  { %v690_v32 = vpop.f32.mrf.mxu2 }
 0x1e2   :  { %v691_v33 = vadd.f32 %v3907_v31, %v690_v32 }
 0x1e4   :  { %v708_v34 = vsel %vm707_vm7, %v691_v33, -inf }
 0x1e5   :  { %709 = vmax.xlane.f32.xlu2 %v708_v34 }
 0x1e9   :  { %v692_v36 = vpop.f32.mrf.mxu2  ;;  %v703_v37 = vpop.f32.mrf.mxu3 }
 0x1ea   :  { %v704_v38 = vadd.f32 %v3911_v35, %v703_v37 }
 0x1ec   :  { %v711_v40 = vsel %vm707_vm7, %v704_v38, -inf }
 0x1ed   :  { %712 = vmax.xlane.f32.xlu2 %v711_v40 }
 0x1f1   :  { %v705_v41 = vpop.f32.mrf.mxu3 }
 0x258   :  { %v710_v42 = vpop.xlane.xlu2 %709 }
 0x259   :  { %v714_v43 = vsub.f32 %v691_v33, %v710_v42 }
 0x25b   :  { %v716_v44 = vmul.f32 1.442695, %v714_v43 }
 0x25d   :  { %3406 = vpow2.f32 %v716_v44 }
 0x260   :  { %v713_v45 = vpop.xlane.xlu2 %712 }
 0x261   :  { %v715_v46 = vsub.f32 %v704_v38, %v713_v45 }
 0x263   :  { %v3407_v47 = vpop.eup %3406  ;;  %v718_v49 = vmul.f32 1.442695, %v715_v46 }
 0x264   :  { %v720_v50 = vsel %vm707_vm7, %v3407_v47, 0.0 }
 0x265   :  { %3408 = vpow2.f32 %v718_v49  ;;  %721 = vadd.xlane.f32.xlu0 %v720_v50  ;;  %v3264_v49 = vld [vmem:[#allocation11 + $0x68] sm:$0xff]  ;;  %v3263_v50 = vld [vmem:[#allocation11 + $0x60] sm:$0xff] }
 0x26b   :  { %v3409_v51 = vpop.eup %3408 }
 0x26c   :  { %v723_v52 = vsel %vm707_vm7, %v3409_v51, 0.0 }
 0x26d   :  { %724 = vadd.xlane.f32.xlu1 %v723_v52  ;;  %v3262_v52 = vld [vmem:[#allocation11 + $0x58] sm:$0xff] }
 0x2d8   :  { %v722_v57 = vpop.xlane.xlu0 %721 }
 0x2d9   :  { %3410 = vrcp.f32 %v722_v57 }
 0x2df   :  { %v3411_v61 = vpop.eup %3410 }
 0x2e0   :  { %v728_v8 = vmul.f32 %v3411_v61, %v3407_v47  ;;  %v725_v1 = vpop.xlane.xlu1 %724  ;;  %v3265_v47 = vld [vmem:[#allocation11 + $0x70] sm:$0xff]  ;;  %v3260_v61 = vld [vmem:[#allocation11 + $0x48] sm:$0xff] }
 0x2e1   :  { %3412 = vrcp.f32 %v725_v1 }
 0x2e2   :  { %v730_v3 = vpack.c.bf16 %v728_v8, %v728_v8 }
 0x2e4   :  { %2683 = vmatmul.msk.bf16.vlgmr.msra.gmra.mxu2 %vm707_vm7, %v730_v3 }
 0x2e5   :  { %841 = vmatpush.bf16.msra.mxu2 %v832_v5 }
 0x2e7   :  { %v3413_v9 = vpop.eup %3412 }
 0x2e8   :  { %v729_v11 = vmul.f32 %v3413_v9, %v3409_v51 }
 0x2ea   :  { %v731_v13 = vpack.c.bf16 %v729_v11, %v729_v11 }
 0x2ec   :  { %2684 = vmatmul.msk.bf16.vlgmr.msra.gmra.mxu3 %vm707_vm7, %v731_v13 }
 0x2ed   :  { %860 = vmatpush.bf16.msra.mxu3 %v851_v15 }
 0x2f4   :  { %786 = vmatmul.bf16.vlgmr.msrb.gmra.mxu2 %v772_v17 }
 0x2fc   :  { %799 = vmatmul.bf16.vlgmr.msrb.gmra.mxu3 %v773_v19  ;;  %v3274_v19 = vld [vmem:[#allocation13 + $0x38] sm:$0xff] }
 0x2fd   :  { %1112 = vmatpush.bf16.msrb.mxu2 %v3274_v19 }
 0x301   :  { %1113 = vmatpush.bf16.msrb.mxu2 %v3273_v20 }
 0x305   :  { %1114 = vmatpush.bf16.msrb.mxu2 %v3272_v21 }
 0x309   :  { %1115 = vmatpush.bf16.msrb.mxu2 %v3271_v63 }
 0x367   :  { %v748_v22 = vpop.f32.mrf.mxu2 }
 0x36f   :  { %v750_v23 = vpop.f32.mrf.mxu2  ;;  %v767_v24 = vpop.f32.mrf.mxu3 }
 0x370   :  { %v771_v25 = vpack.c.bf16 %v767_v24, %v748_v22  ;;  %v3269_v22 = vld [vmem:[#allocation13 + $0x10] sm:$0xff] }
 0x372   :  { %985 = vmatmul.bf16.vlgmr.msra.gmra.mxu1 %v771_v25 }
 0x377   :  { %v769_v26 = vpop.f32.mrf.mxu3  ;;  %v787_v27 = vpop.f32.mrf.mxu2 }
 0x378   :  { %v788_v28 = vadd.f32 %v3907_v31, %v787_v27  ;;  %v3268_v27 = vld [vmem:[#allocation13 + $0x8] sm:$0xff] }
 0x37a   :  { %v804_v29 = vsel %vm707_vm7, %v788_v28, -inf }
 0x37b   :  { %805 = vmax.xlane.f32.xlu2 %v804_v29  ;;  %v3267_v29 = vld [vmem:[#allocation13] sm:$0xff] }
 0x37f   :  { %v789_v30 = vpop.f32.mrf.mxu2  ;;  %v800_v32 = vpop.f32.mrf.mxu3 }
 0x380   :  { %v801_v33 = vadd.f32 %v3911_v35, %v800_v32  ;;  %v3266_v35 = vld [vmem:[#allocation11 + $0x78] sm:$0xff] }
 0x381   :  { %915 = vmatpush.bf16.msra.mxu0 %v3266_v35 }
 0x382   :  { %v807_v34 = vsel %vm707_vm7, %v801_v33, -inf }
 0x383   :  { %808 = vmax.xlane.f32.xlu0 %v807_v34 }
 0x385   :  { %916 = vmatpush.bf16.msra.mxu0 %v3265_v47 }
 0x387   :  { %v802_v36 = vpop.f32.mrf.mxu3 }
 0x389   :  { %917 = vmatpush.bf16.msra.mxu0 %v3264_v49 }
 0x38d   :  { %918 = vmatpush.bf16.msra.mxu0 %v3263_v50 }
 0x391   :  { %919 = vmatpush.bf16.msra.mxu0 %v3262_v52 }
 0x395   :  { %920 = vmatpush.bf16.msra.mxu0 %v3261_v60  ;;  %v1043_v60 = vperm.slane %v3885_v48, 6 }
 0x399   :  { %921 = vmatpush.bf16.msra.mxu0 %v3260_v61 }
 0x39d   :  { %922 = vmatpush.bf16.msra.mxu0 %v3259_v39 }
 0x3ee   :  { %v806_v37 = vpop.xlane.xlu2 %805 }
 0x3ef   :  { %v810_v38 = vsub.f32 %v788_v28, %v806_v37  ;;  %v986_v5 = vpop.f32.mrf.mxu1 }
 0x3f1   :  { %v812_v40 = vmul.f32 1.442695, %v810_v38 }
 0x3f3   :  { %3414 = vpow2.f32 %v812_v40 }
 0x3f6   :  { %v809_v41 = vpop.xlane.xlu0 %808 }
 0x3f7   :  { %v811_v42 = vsub.f32 %v801_v33, %v809_v41  ;;  %v988_v13 = vpop.f32.mrf.mxu1 }
 0x3f9   :  { %v3415_v43 = vpop.eup %3414  ;;  %v814_v44 = vmul.f32 1.442695, %v811_v42 }
 0x3fa   :  { %v816_v31 = vsel %vm707_vm7, %v3415_v43, 0.0 }
 0x3fb   :  { %3416 = vpow2.f32 %v814_v44  ;;  %817 = vadd.xlane.f32.xlu1 %v816_v31 }
 0x401   :  { %v3417_v45 = vpop.eup %3416 }
 0x402   :  { %v819_v46 = vsel %vm707_vm7, %v3417_v45, 0.0 }
 0x403   :  { %820 = vadd.xlane.f32.xlu2 %v819_v46 }
 0x46e   :  { %v818_v51 = vpop.xlane.xlu1 %817 }
 0x46f   :  { %3418 = vrcp.f32 %v818_v51 }
 0x475   :  { %v3419_v53 = vpop.eup %3418 }
 0x476   :  { %v824_v54 = vmul.f32 %v3419_v53, %v3415_v43  ;;  %v821_v55 = vpop.xlane.xlu2 %820 }
 0x477   :  { %3420 = vrcp.f32 %v821_v55 }
 0x478   :  { %v826_v56 = vpack.c.bf16 %v824_v54, %v824_v54  ;;  %v1040_v54 = vperm.slane %v3885_v48, 5 }
 0x47a   :  { %2685 = vmatmul.msk.bf16.vlgmr.msra.gmra.mxu2 %vm707_vm7, %v826_v56 }
 0x47d   :  { %v3421_v57 = vpop.eup %3420 }
 0x47e   :  { %v825_v58 = vmul.f32 %v3421_v57, %v3417_v45 }
 0x480   :  { %v827_v59 = vpack.c.bf16 %v825_v58, %v825_v58 }
 0x482   :  { %2686 = vmatmul.msk.bf16.vlgmr.msra.gmra.mxu3 %vm707_vm7, %v827_v59 }
 0x4fd   :  { %v843_v8 = vpop.f32.mrf.mxu2 }
 0x505   :  { %v845_v1 = vpop.f32.mrf.mxu2  ;;  %v862_v2 = vpop.f32.mrf.mxu3 }
 0x506   :  { %v866_v3 = vpack.c.bf16 %v862_v2, %v843_v8  ;;  %v3282_v2 = vld [vmem:[#allocation14 + $0x38] sm:$0xff] }
 0x507   :  { %1210 = vmatpush.bf16.msrb.mxu3 %v3282_v2  ;;  %v2915_v2 = vld [vmem:[#allocation8 + $0x258] sm:$0xf0] }
 0x508   :  { %923 = vmatmul.bf16.vlgmr.msra.gmra.mxu0 %v866_v3  ;;  %v3281_v3 = vld [vmem:[#allocation14 + $0x30] sm:$0xff] }
 0x50b   :  { %1211 = vmatpush.bf16.msrb.mxu3 %v3281_v3  ;;  %v2993_v3 = vld [vmem:[#allocation8 + $0x2d8] sm:$0xf] }
 0x50d   :  { %v864_v4 = vpop.f32.mrf.mxu3 }
 0x50e   :  { %v3280_v4 = vld [vmem:[#allocation14 + $0x28] sm:$0xff] }
 0x50f   :  { %1212 = vmatpush.bf16.msrb.mxu3 %v3280_v4  ;;  %v3329_v4 = vld [vmem:[#allocation8 + $0x2ec] sm:$0xf0] }
 0x585   :  { %v924_v7 = vpop.f32.mrf.mxu0 }
 0x586   :  { %v987_v9 = vadd.f32 %v986_v5, %v924_v7  ;;  %v3279_v5 = vld [vmem:[#allocation14 + $0x20] sm:$0xff]  ;;  %v3277_v7 = vld [vmem:[#allocation14 + $0x10] sm:$0xff] }
 0x587   :  { %1213 = vmatpush.bf16.msrb.mxu3 %v3279_v5 }
 0x588   :  { %v992_v10 = vadd.f32 %v991_v6, %v987_v9  ;;  %v3276_v9 = vld [vmem:[#allocation14 + $0x8] sm:$0xff] }
 0x58a   :  { %v994_v11 = vadd.f32 %v992_v10, %v3893_v62  ;;  %v3270_v62 = vld [vmem:[#allocation13 + $0x18] sm:$0xff]  ;;  %v1063_v10 = vperm.slane %v3885_v48, 7 }
 0x58b   :  { %1116 = vmatpush.bf16.msrb.mxu2 %v3270_v62 }
 0x58c   :  { %996 = vadd.xlane.f32.xlu0 %v994_v11  ;;  %v1000_v12 = vmul.f32 %v994_v11, %v994_v11 }
 0x58d   :  { %v926_v14 = vpop.f32.mrf.mxu0 }
 0x58e   :  { %v989_v15 = vadd.f32 %v988_v13, %v926_v14  ;;  %1002 = vadd.xlane.f32.xlu2 %v1000_v12  ;;  %v3275_v12 = vld [vmem:[#allocation14] sm:$0xff] }
 0x58f   :  { %1117 = vmatpush.bf16.msrb.mxu2 %v3269_v22 }
 0x590   :  { %v993_v16 = vadd.f32 %v991_v6, %v989_v15  ;;  %v3278_v6 = vld [vmem:[#allocation14 + $0x18] sm:$0xff] }
 0x591   :  { %1214 = vmatpush.bf16.msrb.mxu3 %v3278_v6  ;;  %v2994_v6 = vor.u32 %v3329_v4, %v2993_v3  ;;  %v2873_v3 = vld [vmem:[#allocation8 + $0x1e8] sm:$0xf]  ;;  %v3299_v4 = vld [vmem:[#allocation8 + $0x1fc] sm:$0xf0] }
 0x592   :  { %v995_v17 = vadd.f32 %v993_v16, %v3895_v0 }
 0x593   :  { %1118 = vmatpush.bf16.msrb.mxu2 %v3268_v27 }
 0x594   :  { %998 = vadd.xlane.f32.xlu1 %v995_v17  ;;  %v1001_v18 = vmul.f32 %v995_v17, %v995_v17 }
 0x595   :  { %1215 = vmatpush.bf16.msrb.mxu3 %v3277_v7  ;;  %v3326_v7 = vld [vmem:[#allocation8 + $0x2dc] sm:$0xf] }
 0x596   :  { %1004 = vadd.xlane.f32.xlu0 %v1001_v18 }
 0x597   :  { %1119 = vmatpush.bf16.msrb.mxu2 %v3267_v29 }
 0x599   :  { %1216 = vmatpush.bf16.msrb.mxu3 %v3276_v9  ;;  %v2995_v9 = vld [vmem:[#allocation8 + $0x2f0] sm:$0xf0] }
 0x59b   :  { %1609 = vmatpush.bf16.msra.mxu2 %v2994_v6  ;;  %v2874_v6 = vor.u32 %v3299_v4, %v2873_v3 }
 0x59d   :  { %1217 = vmatpush.bf16.msrb.mxu3 %v3275_v12  ;;  %v3304_v12 = vld [vmem:[#allocation8 + $0x224] sm:$0xf0] }
 0x5ff   :  { %v997_v23 = vpop.xlane.xlu0 %996 }
 0x600   :  { %v1006_v24 = vmul.f32 0.03125, %v997_v23 }
 0x601   :  { %v1003_v25 = vpop.xlane.xlu2 %1002 }
 0x602   :  { %v1010_v26 = vmul.f32 %v1006_v24, %v1006_v24  ;;  %v1008_v0 = vmul.f32 0.03125, %v1003_v25  ;;  %v1014_v51 = vsub.f32 %v994_v11, %v1006_v24 }
 0x604   :  { %v1012_v28 = vsub.f32 %v1008_v0, %v1010_v26 }
 0x606   :  { %v1016_v30 = vadd.f32 1e-12, %v1012_v28 }
 0x607   :  { %v999_v32 = vpop.xlane.xlu1 %998 }
 0x608   :  { %3422 = vrsqrt.f32 %v1016_v30  ;;  %v1007_v33 = vmul.f32 0.03125, %v999_v32  ;;  %vm1024_vm9 = vweird.f32 %v1016_v30  ;;  %v2985_v32 = vld [vmem:[#allocation8 + $0x2d0] sm:$0xf] }
 0x609   :  { %v1005_v34 = vpop.xlane.xlu0 %1004 }
 0x60a   :  { %v1011_v36 = vmul.f32 %v1007_v33, %v1007_v33  ;;  %v1009_v37 = vmul.f32 0.03125, %v1005_v34  ;;  %v1015_v56 = vsub.f32 %v995_v17, %v1007_v33  ;;  %v3328_v33 = vld [vmem:[#allocation8 + $0x2e4] sm:$0xf0]  ;;  %v3325_v34 = vld [vmem:[#allocation8 + $0x2d4] sm:$0xf] }
 0x60c   :  { %v1013_v38 = vsub.f32 %v1009_v37, %v1011_v36  ;;  %v2986_v36 = vor.u32 %v3328_v33, %v2985_v32  ;;  %v2987_v37 = vld [vmem:[#allocation8 + $0x2e8] sm:$0xf0]  ;;  %v2841_v32 = vld [vmem:[#allocation8 + $0x1b0] sm:$0xf]  ;;  %v3292_v33 = vld [vmem:[#allocation8 + $0x1c4] sm:$0xf0] }
 0x60e   :  { %v3423_v40 = vpop.eup %3422  ;;  %v1017_v41 = vadd.f32 1e-12, %v1013_v38  ;;  %v2990_v38 = vor.u32 %v3325_v34, %v2987_v37  ;;  %1581 = vmatpush.bf16.msrb.mxu0 %v2986_v36  ;;  %v3289_v34 = vld [vmem:[#allocation8 + $0x1b4] sm:$0xf]  ;;  %v2842_v36 = vor.u32 %v3292_v33, %v2841_v32  ;;  %v2843_v37 = vld [vmem:[#allocation8 + $0x1c8] sm:$0xf0] }
 0x60f   :  { %v1019_v42 = vmul.f32 %v3423_v40, %v1016_v30  ;;  %vm1025_vm8 = vweird.f32 %v3423_v40  ;;  %v3287_v32 = vld [vmem:[#allocation8 + $0x19c] sm:$0xf0]  ;;  %v3284_v33 = vld [vmem:[#allocation8 + $0x18c] sm:$0xf] }
 0x610   :  { %3424 = vrsqrt.f32 %v1017_v41  ;;  %vm1026_vm10 = vmor %vm1024_vm9, %vm1025_vm8  ;;  %vm1034_vm12 = vweird.f32 %v1017_v41  ;;  %1595 = vmatpush.bf16.msrb.mxu1 %v2990_v38  ;;  %v2921_v38 = vld [vmem:[#allocation8 + $0x248] sm:$0xf] }
 0x611   :  { %v1020_v43 = vmul.f32 %v3423_v40, %v1019_v42 }
 0x613   :  { %v1021_v44 = vmul.f32 0.5, %v1020_v43 }
 0x615   :  { %v1022_v31 = vsub.f32 1.5, %v1021_v44 }
 0x616   :  { %v3425_v45 = vpop.eup %3424 }
 0x617   :  { %v1023_v46 = vmul.f32 %v3423_v40, %v1022_v31  ;;  %v1029_v35 = vmul.f32 %v3425_v45, %v1017_v41  ;;  %vm1035_vm11 = vweird.f32 %v3425_v45 }
 0x618   :  { %vm1036_vm13 = vmor %vm1034_vm12, %vm1035_vm11 }
 0x619   :  { %v1030_v47 = vmul.f32 %v3425_v45, %v1029_v35  ;;  %v1027_v49 = vsel %vm1026_vm10, %v3423_v40, %v1023_v46  ;;  %v3940_v40 = vld [vmem:[#allocation7 + $0x8] sm:$0xff] }
 0x61a   :  { %v1038_v53 = vmul.f32 %v1027_v49, %v1014_v51  ;;  %v1161_v41 = vperm.slane %v3940_v40, 0  ;;  %v2961_v49 = vld [vmem:[#allocation8 + $0x2a0] sm:$0xf]  ;;  %v3319_v51 = vld [vmem:[#allocation8 + $0x2a4] sm:$0xf] }
 0x61b   :  { %v1031_v50 = vmul.f32 0.5, %v1030_v47 }
 0x61c   :  { %v1041_v59 = vmul.f32 %v1040_v54, %v1038_v53  ;;  %v2963_v53 = vld [vmem:[#allocation8 + $0x2b8] sm:$0xf0] }
 0x61d   :  { %v1032_v52 = vsub.f32 1.5, %v1031_v50  ;;  %v3322_v50 = vld [vmem:[#allocation8 + $0x2b4] sm:$0xf0] }
 0x61e   :  { %v1044_v39 = vadd.f32 %v1043_v60, %v1041_v59  ;;  %v2939_v59 = vld [vmem:[#allocation8 + $0x288] sm:$0xf0] }
 0x61f   :  { %v1033_v55 = vmul.f32 %v3425_v45, %v1032_v52  ;;  %v2962_v52 = vor.u32 %v3322_v50, %v2961_v49  ;;  %v3286_v49 = vld [vmem:[#allocation8 + $0x194] sm:$0xf0]  ;;  %v3283_v50 = vld [vmem:[#allocation8 + $0x184] sm:$0xf] }
 0x621   :  { %v1037_v57 = vsel %vm1036_vm13, %v3425_v45, %v1033_v55  ;;  %1582 = vmatpush.bf16.msrb.mxu0 %v2962_v52  ;;  %v2937_v55 = vld [vmem:[#allocation8 + $0x270] sm:$0xf]  ;;  %v2819_v52 = vld [vmem:[#allocation8 + $0x198] sm:$0xf0] }
 0x622   :  { %v1039_v58 = vmul.f32 %v1037_v57, %v1015_v56  ;;  %v3316_v56 = vld [vmem:[#allocation8 + $0x284] sm:$0xf0]  ;;  %v3313_v57 = vld [vmem:[#allocation8 + $0x274] sm:$0xf] }
 0x624   :  { %v1042_v61 = vmul.f32 %v1040_v54, %v1039_v58  ;;  %v2966_v54 = vor.u32 %v3319_v51, %v2963_v53  ;;  %v2938_v58 = vor.u32 %v3316_v56, %v2937_v55  ;;  %v2897_v53 = vld [vmem:[#allocation8 + $0x218] sm:$0xf]  ;;  %v2822_v55 = vor.u32 %v3283_v50, %v2819_v52 }
 0x625   :  { %v3306_v52 = vld [vmem:[#allocation8 + $0x234] sm:$0xf0] }
 0x626   :  { %v3936_v8 = vadd.f32 %v1043_v60, %v1042_v61  ;;  %1596 = vmatpush.bf16.msrb.mxu1 %v2966_v54  ;;  %v2942_v60 = vor.u32 %v3313_v57, %v2939_v59  ;;  %1583 = vmatpush.bf16.msrb.mxu0 %v2938_v58  ;;  %v2913_v61 = vld [vmem:[#allocation8 + $0x240] sm:$0xf]  ;;  %v3305_v54 = vld [vmem:[#allocation8 + $0x22c] sm:$0xf0]  ;;  %v3302_v57 = vld [vmem:[#allocation8 + $0x21c] sm:$0xf] }
 0x627   :  { %v2898_v56 = vor.u32 %v3305_v54, %v2897_v53  ;;  %v2899_v58 = vld [vmem:[#allocation8 + $0x230] sm:$0xf0]  ;;  %v3001_v59 = vld [vmem:[#allocation8 + $0x2e0] sm:$0xf]  ;;  %v3303_v53 = vld [vmem:[#allocation8 + $0x224] sm:$0xf] }
 0x628   :  { %v1046_v1 = vpack.c.bf16 %v3936_v8, %v1044_v39 }
 0x62a   :  { %1120 = vmatmul.bf16.vlgmr.msrb.gmra.mxu2 %v1046_v1  ;;  %1597 = vmatpush.bf16.msrb.mxu1 %v2942_v60  ;;  %v2902_v60 = vor.u32 %v3302_v57, %v2899_v58  ;;  %v2907_v57 = vld [vmem:[#allocation8 + $0x238] sm:$0xf0] }
 0x62b   :  { %v2910_v58 = vor.u32 %v3303_v53, %v2907_v57 }
 0x6ad   :  { %v1121_v11 = vpop.f32.mrf.mxu2 }
 0x6ae   :  { %v1122_v13 = vadd.f32 %v1121_v11, %v1063_v10  ;;  %v2889_v11 = vld [vmem:[#allocation8 + $0x210] sm:$0xf] }
 0x6b0   :  { %v1126_v14 = vmul.f32 %v1122_v13, %v1122_v13 }
 0x6b2   :  { %v1128_v15 = vmul.f32 %v1126_v14, %v1122_v13  ;;  %v2890_v14 = vor.u32 %v3304_v12, %v2889_v11 }
 0x6b4   :  { %v1130_v16 = vmul.f32 0.044715, %v1128_v15  ;;  %v2891_v15 = vld [vmem:[#allocation8 + $0x228] sm:$0xf0] }
 0x6b5   :  { %v1123_v17 = vpop.f32.mrf.mxu2 }
 0x6b6   :  { %v1132_v18 = vadd.f32 %v1130_v16, %v1122_v13  ;;  %v1124_v19 = vadd.f32 %v1123_v17, %v1063_v10  ;;  %v2998_v10 = vor.u32 %v3326_v7, %v2995_v9  ;;  %v2969_v16 = vld [vmem:[#allocation8 + $0x2a8] sm:$0xf]  ;;  %v3323_v17 = vld [vmem:[#allocation8 + $0x2bc] sm:$0xf0]  ;;  %v2875_v7 = vld [vmem:[#allocation8 + $0x200] sm:$0xf0] }
 0x6b7   :  { %v2977_v9 = vld [vmem:[#allocation8 + $0x2b0] sm:$0xf] }
 0x6b8   :  { %v1134_v20 = vmul.f32 0.7978846, %v1132_v18  ;;  %v1127_v21 = vmul.f32 %v1124_v19, %v1124_v19  ;;  %1623 = vmatpush.bf16.msra.mxu3 %v2998_v10  ;;  %v3324_v10 = vld [vmem:[#allocation8 + $0x2c4] sm:$0xf0] }
 0x6ba   :  { %v1129_v63 = vmul.f32 %v1127_v21, %v1124_v19  ;;  %3426 = vtanh.f32 %v1134_v20  ;;  %v3320_v20 = vld [vmem:[#allocation8 + $0x2ac] sm:$0xf]  ;;  %v2971_v21 = vld [vmem:[#allocation8 + $0x2c0] sm:$0xf0] }
 0x6bc   :  { %v1131_v62 = vmul.f32 0.044715, %v1129_v63  ;;  %v2974_v63 = vor.u32 %v3320_v20, %v2971_v21  ;;  %v3293_v20 = vld [vmem:[#allocation8 + $0x1cc] sm:$0xf0]  ;;  %v3290_v21 = vld [vmem:[#allocation8 + $0x1bc] sm:$0xf] }
 0x6be   :  { %v1133_v22 = vadd.f32 %v1131_v62, %v1124_v19  ;;  %v2865_v62 = vld [vmem:[#allocation8 + $0x1e0] sm:$0xf]  ;;  %1624 = vmatpush.bf16.msra.mxu3 %v2974_v63 }
 0x6c0   :  { %v1135_v23 = vmul.f32 0.7978846, %v1133_v22  ;;  %v3427_v24 = vpop.eup %3426  ;;  %v3298_v22 = vld [vmem:[#allocation8 + $0x1f4] sm:$0xf0] }
 0x6c1   :  { %v1138_v48 = vadd.f32 1.0, %v3427_v24  ;;  %v2866_v24 = vor.u32 %v3298_v22, %v2865_v62 }
 0x6c2   :  { %3428 = vtanh.f32 %v1135_v23  ;;  %v3295_v23 = vld [vmem:[#allocation8 + $0x1e4] sm:$0xf] }
 0x6c3   :  { %v1140_v26 = vmul.f32 0.5, %v1138_v48  ;;  %v2867_v48 = vld [vmem:[#allocation8 + $0x1f8] sm:$0xf0] }
 0x6c5   :  { %v1142_v28 = vmul.f32 %v1140_v26, %v1122_v13  ;;  %v3301_v13 = vld [vmem:[#allocation8 + $0x214] sm:$0xf]  ;;  %v3317_v26 = vld [vmem:[#allocation8 + $0x28c] sm:$0xf0] }
 0x6c6   :  { %v2894_v18 = vor.u32 %v3301_v13, %v2891_v15  ;;  %v2978_v13 = vor.u32 %v3324_v10, %v2977_v9  ;;  %v2979_v15 = vld [vmem:[#allocation8 + $0x2c8] sm:$0xf0]  ;;  %v3291_v9 = vld [vmem:[#allocation8 + $0x1c4] sm:$0xf]  ;;  %v2859_v10 = vld [vmem:[#allocation8 + $0x1d8] sm:$0xf0] }
 0x6c8   :  { %v3429_v25 = vpop.eup %3428 }
 0x6c9   :  { %v1139_v0 = vadd.f32 1.0, %v3429_v25  ;;  %v2945_v25 = vld [vmem:[#allocation8 + $0x278] sm:$0xf] }
 0x6cb   :  { %v1141_v27 = vmul.f32 0.5, %v1139_v0  ;;  %v2870_v0 = vor.u32 %v3295_v23, %v2867_v48  ;;  %v2851_v23 = vld [vmem:[#allocation8 + $0x1d0] sm:$0xf0] }
 0x6cc   :  { %v2854_v48 = vor.u32 %v3290_v21, %v2851_v23 }
 0x6cd   :  { %v1143_v29 = vmul.f32 %v1141_v27, %v1124_v19  ;;  %v2970_v19 = vor.u32 %v3323_v17, %v2969_v16  ;;  %v2946_v27 = vor.u32 %v3317_v26, %v2945_v25  ;;  %v3318_v25 = vld [vmem:[#allocation8 + $0x294] sm:$0xf0]  ;;  %v3315_v26 = vld [vmem:[#allocation8 + $0x284] sm:$0xf] }
 0x6cf   :  { %v1144_v30 = vpack.c.bf16 %v1143_v29, %v1142_v28  ;;  %1610 = vmatpush.bf16.msra.mxu2 %v2970_v19  ;;  %v3314_v28 = vld [vmem:[#allocation8 + $0x27c] sm:$0xf]  ;;  %v2947_v29 = vld [vmem:[#allocation8 + $0x290] sm:$0xf0]  ;;  %v2849_v19 = vld [vmem:[#allocation8 + $0x1b8] sm:$0xf] }
 0x6d0   :  { %v2850_v22 = vor.u32 %v3293_v20, %v2849_v19  ;;  %v2835_v19 = vld [vmem:[#allocation8 + $0x1a8] sm:$0xf0] }
 0x6d1   :  { %1218 = vmatmul.bf16.vlgmr.msrb.gmra.mxu3 %v1144_v30  ;;  %v2950_v30 = vor.u32 %v3314_v28, %v2947_v29 }
 0x6d3   :  { %1611 = vmatpush.bf16.msra.mxu2 %v2946_v27  ;;  %1625 = vmatpush.bf16.msra.mxu3 %v2950_v30  ;;  %v2825_v30 = vld [vmem:[#allocation8 + $0x188] sm:$0xf] }
 0x754   :  { %v1219_v42 = vpop.f32.mrf.mxu3 }
 0x755   :  { %v1220_v43 = vadd.f32 %v1219_v42, %v1161_v41  ;;  %v2846_v42 = vor.u32 %v3289_v34, %v2843_v37  ;;  %v2827_v37 = vld [vmem:[#allocation8 + $0x1a0] sm:$0xf0] }
 0x757   :  { %v3943_v44 = vadd.f32 %v1220_v43, %v1044_v39  ;;  %v3310_v39 = vld [vmem:[#allocation8 + $0x254] sm:$0xf0] }
 0x758   :  { %v2914_v1 = vor.u32 %v3310_v39, %v2913_v61  ;;  %v3330_v61 = vld [vmem:[#allocation8 + $0x2f4] sm:$0xf0]  ;;  %v3327_v39 = vld [vmem:[#allocation8 + $0x2e4] sm:$0xf] }
 0x759   :  { %1226 = vadd.xlane.f32.xlu1 %v3943_v44  ;;  %v1230_v31 = vmul.f32 %v3943_v44, %v3943_v44 }
 0x75a   :  { %1584 = vmatpush.bf16.msrb.mxu0 %v2914_v1  ;;  %v3002_v1 = vor.u32 %v3330_v61, %v3001_v59  ;;  %v2881_v59 = vld [vmem:[#allocation8 + $0x1f0] sm:$0xf] }
 0x75b   :  { %1232 = vadd.xlane.f32.xlu0 %v1230_v31  ;;  %v3308_v31 = vld [vmem:[#allocation8 + $0x24c] sm:$0xf] }
 0x75c   :  { %v1221_v45 = vpop.f32.mrf.mxu3 }
 0x75d   :  { %v1222_v46 = vadd.f32 %v1221_v45, %v1161_v41  ;;  %v3311_v41 = vld [vmem:[#allocation8 + $0x25c] sm:$0xf0]  ;;  %v2923_v45 = vld [vmem:[#allocation8 + $0x260] sm:$0xf0] }
 0x75e   :  { %1585 = vmatpush.bf16.msrb.mxu0 %v2890_v14  ;;  %v2922_v43 = vor.u32 %v3311_v41, %v2921_v38  ;;  %v3321_v14 = vld [vmem:[#allocation8 + $0x2b4] sm:$0xf]  ;;  %v2929_v38 = vld [vmem:[#allocation8 + $0x250] sm:$0xf] }
 0x75f   :  { %v3949_v35 = vadd.f32 %v1222_v46, %v3936_v8  ;;  %v3307_v8 = vld [vmem:[#allocation8 + $0x244] sm:$0xf]  ;;  %v2926_v46 = vor.u32 %v3308_v31, %v2923_v45  ;;  %v2982_v17 = vor.u32 %v3321_v14, %v2979_v15  ;;  %v3309_v31 = vld [vmem:[#allocation8 + $0x254] sm:$0xf]  ;;  %v2931_v45 = vld [vmem:[#allocation8 + $0x268] sm:$0xf0]  ;;  %v2862_v14 = vor.u32 %v3291_v9, %v2859_v10 }
 0x760   :  { %v2918_v5 = vor.u32 %v3307_v8, %v2915_v2  ;;  %1612 = vmatpush.bf16.msra.mxu2 %v2922_v43  ;;  %v3003_v8 = vld [vmem:[#allocation8 + $0x2f8] sm:$0xf0]  ;;  %v3312_v43 = vld [vmem:[#allocation8 + $0x264] sm:$0xf0]  ;;  %v2934_v50 = vor.u32 %v3309_v31, %v2931_v45  ;;  %v2833_v15 = vld [vmem:[#allocation8 + $0x190] sm:$0xf] }
 0x761   :  { %1228 = vadd.xlane.f32.xlu2 %v3949_v35  ;;  %v1231_v47 = vmul.f32 %v3949_v35, %v3949_v35  ;;  %1626 = vmatpush.bf16.msra.mxu3 %v2926_v46  ;;  %v3006_v2 = vor.u32 %v3327_v39, %v3003_v8  ;;  %v3297_v39 = vld [vmem:[#allocation8 + $0x1f4] sm:$0xf]  ;;  %v2883_v8 = vld [vmem:[#allocation8 + $0x208] sm:$0xf0] }
 0x762   :  { %1598 = vmatpush.bf16.msrb.mxu1 %v2918_v5  ;;  %1586 = vmatpush.bf16.msrb.mxu0 %v2866_v24  ;;  %v3296_v5 = vld [vmem:[#allocation8 + $0x1ec] sm:$0xf]  ;;  %v2953_v24 = vld [vmem:[#allocation8 + $0x280] sm:$0xf] }
 0x763   :  { %1234 = vadd.xlane.f32.xlu1 %v1231_v47  ;;  %v2817_v47 = vld [vmem:[#allocation8 + $0x180] sm:$0xf]  ;;  %v2878_v12 = vor.u32 %v3296_v5, %v2875_v7  ;;  %v2954_v28 = vor.u32 %v3318_v25, %v2953_v24  ;;  %v2886_v5 = vor.u32 %v3297_v39, %v2883_v8  ;;  %v3294_v7 = vld [vmem:[#allocation8 + $0x1d4] sm:$0xf0] }
 0x764   :  { %v2818_v51 = vor.u32 %v3286_v49, %v2817_v47  ;;  %1613 = vmatpush.bf16.msra.mxu2 %v2898_v56  ;;  %v2930_v47 = vor.u32 %v3312_v43, %v2929_v38 }
 0x765   :  { %1627 = vmatpush.bf16.msra.mxu3 %v2902_v60  ;;  %v3300_v60 = vld [vmem:[#allocation8 + $0x204] sm:$0xf0] }
 0x766   :  { %1599 = vmatpush.bf16.msrb.mxu1 %v2894_v18  ;;  %1587 = vmatpush.bf16.msrb.mxu0 %v2842_v36  ;;  %v2826_v36 = vor.u32 %v3287_v32, %v2825_v30  ;;  %v2882_v3 = vor.u32 %v3300_v60, %v2881_v59 }
 0x768   :  { %1614 = vmatpush.bf16.msra.mxu2 %v2874_v6  ;;  %v2857_v6 = vld [vmem:[#allocation8 + $0x1c0] sm:$0xf] }
 0x769   :  { %1628 = vmatpush.bf16.msra.mxu3 %v2878_v12  ;;  %v2858_v12 = vor.u32 %v3294_v7, %v2857_v6 }
 0x76a   :  { %1600 = vmatpush.bf16.msrb.mxu1 %v2870_v0  ;;  %1588 = vmatpush.bf16.msrb.mxu0 %v2818_v51  ;;  %v2955_v0 = vld [vmem:[#allocation8 + $0x298] sm:$0xf0]  ;;  %v2905_v51 = vld [vmem:[#allocation8 + $0x220] sm:$0xf] }
 0x76b   :  { %v2958_v29 = vor.u32 %v3315_v26, %v2955_v0  ;;  %v2906_v56 = vor.u32 %v3306_v52, %v2905_v51 }
 0x76c   :  { %1615 = vmatpush.bf16.msra.mxu2 %v2850_v22 }
 0x76d   :  { %1629 = vmatpush.bf16.msra.mxu3 %v2854_v48 }
 0x76e   :  { %1601 = vmatpush.bf16.msrb.mxu1 %v2846_v42  ;;  %1637 = vmatpush.bf16.msra.mxu0 %v3002_v1  ;;  %v2830_v42 = vor.u32 %v3284_v33, %v2827_v37  ;;  %v1273_v33 = vperm.slane %v3940_v40, 2 }
 0x770   :  { %1616 = vmatpush.bf16.msra.mxu2 %v2826_v36 }
 0x771   :  { %1630 = vmatpush.bf16.msra.mxu3 %v2830_v42  ;;  %v1327_v42 = vld [vmem:[#allocation10 + $0x6] sm:$0x3f] }
 0x772   :  { %1602 = vmatpush.bf16.msrb.mxu1 %v2822_v55  ;;  %1638 = vmatpush.bf16.msra.mxu0 %v2978_v13  ;;  %v1331_v43 = vperm.slane %v1327_v42, 2  ;;  %v1332_v31 = vperm.slane %v1327_v42, 3  ;;  %v1329_v52 = vperm.slane %v1327_v42, 0  ;;  %v1330_v53 = vperm.slane %v1327_v42, 1 }
 0x773   :  { %v1334_v59 = vperm.slane %v1327_v42, 5 }
 0x776   :  { %1651 = vmatpush.bf16.msra.mxu1 %v3006_v2  ;;  %1639 = vmatpush.bf16.msra.mxu0 %v2954_v28 }
 0x77a   :  { %1652 = vmatpush.bf16.msra.mxu1 %v2982_v17  ;;  %1640 = vmatpush.bf16.msra.mxu0 %v2930_v47  ;;  %v3288_v17 = vld [vmem:[#allocation8 + $0x1a4] sm:$0xf0] }
 0x77e   :  { %1653 = vmatpush.bf16.msra.mxu1 %v2958_v29  ;;  %1641 = vmatpush.bf16.msra.mxu0 %v2906_v56 }
 0x782   :  { %1654 = vmatpush.bf16.msra.mxu1 %v2934_v50  ;;  %1642 = vmatpush.bf16.msra.mxu0 %v2882_v3 }
 0x786   :  { %1655 = vmatpush.bf16.msra.mxu1 %v2910_v58  ;;  %1643 = vmatpush.bf16.msra.mxu0 %v2858_v12  ;;  %v1333_v58 = vperm.slane %v1327_v42, 4 }
 0x78a   :  { %1656 = vmatpush.bf16.msra.mxu1 %v2886_v5 }
 0x78e   :  { %1657 = vmatpush.bf16.msra.mxu1 %v2862_v14 }
 0x7cc   :  { %v1227_v11 = vpop.xlane.xlu1 %1226 }
 0x7cd   :  { %v3954_v16 = vmul.f32 0.03125, %v1227_v11 }
 0x7ce   :  { %v1233_v18 = vpop.xlane.xlu0 %1232 }
 0x7cf   :  { %v1240_v63 = vmul.f32 %v3954_v16, %v3954_v16  ;;  %v1238_v62 = vmul.f32 0.03125, %v1233_v18  ;;  %v3285_v18 = vld [vmem:[#allocation8 + $0x194] sm:$0xf]  ;;  %v1244_v26 = vsub.f32 %v3943_v44, %v3954_v16 }
 0x7d0   :  { %v2838_v23 = vor.u32 %v3285_v18, %v2835_v19 }
 0x7d1   :  { %v1242_v27 = vsub.f32 %v1238_v62, %v1240_v63  ;;  %v2834_v63 = vor.u32 %v3288_v17, %v2833_v15 }
 0x7d2   :  { %1658 = vmatpush.bf16.msra.mxu1 %v2838_v23 }
 0x7d3   :  { %v3958_v34 = vadd.f32 1e-12, %v1242_v27  ;;  %1644 = vmatpush.bf16.msra.mxu0 %v2834_v63  ;;  %v1270_v27 = vperm.slane %v3940_v40, 1 }
 0x7d4   :  { %v1229_v41 = vpop.xlane.xlu2 %1228 }
 0x7d5   :  { %3430 = vrsqrt.f32 %v3958_v34  ;;  %v3961_v46 = vmul.f32 0.03125, %v1229_v41  ;;  %vm1254_vm15 = vweird.f32 %v3958_v34 }
 0x7d6   :  { %v1235_v49 = vpop.xlane.xlu1 %1234 }
 0x7d7   :  { %v1241_v54 = vmul.f32 %v3961_v46, %v3961_v46  ;;  %v1239_v55 = vmul.f32 0.03125, %v1235_v49  ;;  %v1245_v30 = vsub.f32 %v3949_v35, %v3961_v46 }
 0x7d9   :  { %v1243_v61 = vsub.f32 %v1239_v55, %v1241_v54 }
 0x7db   :  { %v3431_v1 = vpop.eup %3430  ;;  %v1247_v2 = vadd.f32 1e-12, %v1243_v61 }
 0x7dc   :  { %v1249_v4 = vmul.f32 %v3431_v1, %v3958_v34  ;;  %vm1255_vm14 = vweird.f32 %v3431_v1 }
 0x7dd   :  { %3432 = vrsqrt.f32 %v1247_v2  ;;  %vm1256_vm0 = vmor %vm1254_vm15, %vm1255_vm14  ;;  %vm1264_vm2 = vweird.f32 %v1247_v2 }
 0x7de   :  { %v1250_v11 = vmul.f32 %v3431_v1, %v1249_v4 }
 0x7e0   :  { %v1251_v13 = vmul.f32 0.5, %v1250_v11 }
 0x7e2   :  { %v1252_v20 = vsub.f32 1.5, %v1251_v13 }
 0x7e3   :  { %v3433_v21 = vpop.eup %3432 }
 0x7e4   :  { %v1253_v62 = vmul.f32 %v3431_v1, %v1252_v20  ;;  %v1259_v22 = vmul.f32 %v3433_v21, %v1247_v2  ;;  %vm1265_vm1 = vweird.f32 %v3433_v21 }
 0x7e5   :  { %vm1266_vm3 = vmor %vm1264_vm2, %vm1265_vm1 }
 0x7e6   :  { %v1260_v24 = vmul.f32 %v3433_v21, %v1259_v22  ;;  %v1257_v48 = vsel %vm1256_vm0, %v3431_v1, %v1253_v62  ;;  %vm2323_vm0 = vcmask 1041409  }
 0x7e7   :  { %v1268_v28 = vmul.f32 %v1257_v48, %v1244_v26 }
 0x7e8   :  { %v1261_v25 = vmul.f32 0.5, %v1260_v24 }
 0x7e9   :  { %v1271_v34 = vmul.f32 %v1270_v27, %v1268_v28 }
 0x7ea   :  { %v1262_v0 = vsub.f32 1.5, %v1261_v25  ;;  %v3464_v25 = vld [vmem:[#allocation5] ss:$0 sm:$0xff] }
 0x7eb   :  { %v3973_v38 = vadd.f32 %v1273_v33, %v1271_v34 }
 0x7ec   :  { %v1263_v29 = vmul.f32 %v3433_v21, %v1262_v0 }
 0x7ee   :  { %v1267_v32 = vsel %vm1266_vm3, %v3433_v21, %v1263_v29 }
 0x7ef   :  { %v1269_v36 = vmul.f32 %v1267_v32, %v1245_v30 }
 0x7f1   :  { %v1272_v37 = vmul.f32 %v1270_v27, %v1269_v36 }
 0x7f3   :  { %v3975_v44 = vadd.f32 %v1273_v33, %v1272_v37  ;;  %v3465_v33 = vld [vmem:[#allocation5 + $0x1] ss:$0 sm:$0xff] }
 0x7f5   :  { %v1276_v16 = vpack.c.bf16 %v3975_v44, %v3973_v38 }
 0x7f7   :  { %1589 = vmatmul.bf16.vlgmr.msrb.gmra.mxu0 %v1276_v16  ;;  %1603 = vmatmul.bf16.vlgmr.msrb.gmra.mxu1 %v1276_v16 }
 0x7f8   :  { %1617 = vmatmul.bf16.vlgmr.msra.gmra.mxu2 %v1276_v16  ;;  %1631 = vmatmul.bf16.vlgmr.msra.gmra.mxu3 %v1276_v16 }
 0x807   :  { %1645 = vmatmul.bf16.vlgmr.msra.gmra.mxu0 %v1276_v16  ;;  %1659 = vmatmul.bf16.vlgmr.msra.gmra.mxu1 %v1276_v16 }
 0x874   :  { %v1590_v35 = vpop.f32.mrf.mxu0  ;;  %v1604_v41 = vpop.f32.mrf.mxu1 }
 0x875   :  { %v1591_v56 = vadd.f32 %v1590_v35, %v1329_v52  ;;  %v1605_v57 = vadd.f32 %v1604_v41, %v1330_v53 }
 0x877   :  { %v1698_v3 = vpack.c.bf16 %v1591_v56, %v1591_v56  ;;  %v1793_v4 = vpack.c.bf16 %v1605_v57, %v1605_v57 }
 0x87b   :  { %v1618_v45 = vpop.f32.mrf.mxu2  ;;  %v1632_v46 = vpop.f32.mrf.mxu3 }
 0x87c   :  { %v1619_v47 = vadd.f32 %v1618_v45, %v1331_v43  ;;  %v1633_v49 = vadd.f32 %v1632_v46, %v1332_v31  ;;  %v1592_v50 = vpop.f32.mrf.mxu0  ;;  %v1606_v51 = vpop.f32.mrf.mxu1 }
 0x87d   :  { %v1593_v12 = vadd.f32 %v1592_v50, %v1329_v52  ;;  %v1607_v13 = vadd.f32 %v1606_v51, %v1330_v53 }
 0x87e   :  { %v1700_v54 = vpack.c.bf16 %v1619_v47, %v1619_v47  ;;  %v1795_v55 = vpack.c.bf16 %v1633_v49, %v1633_v49 }
 0x87f   :  { %v1699_v19 = vpack.c.bf16 %v1593_v12, %v1593_v12  ;;  %v1794_v20 = vpack.c.bf16 %v1607_v13, %v1607_v13  ;;  %v3336_v12 = vld [vmem:[#allocation11 + $0xa8] sm:$0xff]  ;;  %v3335_v13 = vld [vmem:[#allocation11 + $0xa0] sm:$0xff] }
 0x880   :  { %1711 = vmatpush.bf16.xpose.msrb.mxu2 %v1700_v54  ;;  %1806 = vmatpush.bf16.xpose.msrb.mxu0 %v1795_v55 }
 0x883   :  { %v1620_v60 = vpop.f32.mrf.mxu2  ;;  %v1634_v61 = vpop.f32.mrf.mxu3 }
 0x884   :  { %v1621_v39 = vadd.f32 %v1620_v60, %v1331_v43  ;;  %v1635_v8 = vadd.f32 %v1634_v61, %v1332_v31  ;;  %v1646_v1 = vpop.f32.mrf.mxu0  ;;  %v1660_v2 = vpop.f32.mrf.mxu1 }
 0x885   :  { %v1647_v5 = vadd.f32 %v1646_v1, %v1333_v58  ;;  %v1661_v6 = vadd.f32 %v1660_v2, %v1334_v59 }
 0x886   :  { %v1701_v7 = vpack.c.bf16 %v1621_v39, %v1621_v39  ;;  %v1796_v9 = vpack.c.bf16 %v1635_v8, %v1635_v8 }
 0x887   :  { %v1702_v10 = vpack.c.bf16 %v1647_v5, %v1647_v5  ;;  %v1797_v11 = vpack.c.bf16 %v1661_v6, %v1661_v6  ;;  %1712 = vmatmul.bf16.vlgmr.msrb.gmra.mxu2 %v1698_v3  ;;  %1807 = vmatmul.bf16.vlgmr.msrb.gmra.mxu0 %v1793_v4  ;;  %v3338_v3 = vld [vmem:[#allocation11 + $0xb8] sm:$0xff]  ;;  %v3337_v5 = vld [vmem:[#allocation11 + $0xb0] sm:$0xff] }
 0x888   :  { %1724 = vmatpush.bf16.xpose.msrb.mxu3 %v1701_v7  ;;  %1819 = vmatpush.bf16.xpose.msrb.mxu1 %v1796_v9  ;;  %v3346_v4 = vld [vmem:[#allocation11 + $0xf8] sm:$0xff] }
 0x889   :  { %v1758_v14 = vsel %vm735_vm6, %v1702_v10, 0  ;;  %v1853_v15 = vsel %vm735_vm6, %v1797_v11, 0  ;;  %1936 = vmatpush.bf16.msra.mxu0 %v3346_v4 }
 0x88a   :  { %1767 = vmatpush.bf16.msra.mxu2 %v1758_v14 }
 0x88c   :  { %v1648_v17 = vpop.f32.mrf.mxu0  ;;  %v1662_v18 = vpop.f32.mrf.mxu1 }
 0x88d   :  { %v1649_v21 = vadd.f32 %v1648_v17, %v1333_v58  ;;  %v1663_v63 = vadd.f32 %v1662_v18, %v1334_v59 }
 0x88e   :  { %1862 = vmatpush.bf16.msrb.mxu2 %v1853_v15 }
 0x88f   :  { %v1703_v62 = vpack.c.bf16 %v1649_v21, %v1649_v21  ;;  %v1798_v22 = vpack.c.bf16 %v1663_v63, %v1663_v63  ;;  %1725 = vmatmul.bf16.vlgmr.msrb.gmra.mxu3 %v1699_v19  ;;  %1820 = vmatmul.bf16.vlgmr.msrb.gmra.mxu1 %v1794_v20  ;;  %v3334_v19 = vld [vmem:[#allocation11 + $0x98] sm:$0xff] }
 0x890   :  { %1998 = vmatpush.bf16.msra.mxu1 %v3338_v3 }
 0x891   :  { %v1777_v23 = vsel %vm735_vm6, %v1703_v62, 0  ;;  %v1872_v24 = vsel %vm735_vm6, %v1798_v22, 0 }
 0x892   :  { %1786 = vmatpush.bf16.msra.mxu3 %v1777_v23 }
 0x894   :  { %1999 = vmatpush.bf16.msra.mxu1 %v3337_v5  ;;  %v3348_v5 = vld [vmem:[#allocation13 + $0x48] sm:$0xff] }
 0x896   :  { %1881 = vmatpush.bf16.msrb.mxu3 %v1872_v24  ;;  %v3345_v24 = vld [vmem:[#allocation11 + $0xf0] sm:$0xff] }
 0x897   :  { %1937 = vmatpush.bf16.msra.mxu0 %v3345_v24 }
 0x898   :  { %2000 = vmatpush.bf16.msra.mxu1 %v3336_v12 }
 0x89c   :  { %2001 = vmatpush.bf16.msra.mxu1 %v3335_v13 }
 0x8a0   :  { %2002 = vmatpush.bf16.msra.mxu1 %v3334_v19 }
 0x904   :  { %v1808_v48 = vpop.f32.mrf.mxu0 }
 0x905   :  { %v1809_v26 = vadd.f32 %v3464_v25, %v1808_v48  ;;  %v3333_v48 = vld [vmem:[#allocation11 + $0x90] sm:$0xff] }
 0x906   :  { %2003 = vmatpush.bf16.msra.mxu1 %v3333_v48 }
 0x907   :  { %v1825_v0 = vsel %vm707_vm7, %v1809_v26, -inf }
 0x908   :  { %1826 = vmax.xlane.f32.xlu1 %v1825_v0  ;;  %v3343_v0 = vld [vmem:[#allocation11 + $0xe0] sm:$0xff] }
 0x90a   :  { %v1713_v27 = vpop.f32.mrf.mxu2 }
 0x90b   :  { %v1714_v28 = vadd.f32 %v3464_v25, %v1713_v27  ;;  %v3344_v25 = vld [vmem:[#allocation11 + $0xe8] sm:$0xff]  ;;  %v3331_v27 = vld [vmem:[#allocation11 + $0x80] sm:$0xff] }
 0x90c   :  { %v1810_v29 = vpop.f32.mrf.mxu0  ;;  %v1821_v30 = vpop.f32.mrf.mxu1  ;;  %1938 = vmatpush.bf16.msra.mxu0 %v3344_v25 }
 0x90d   :  { %v1730_v32 = vsel %vm707_vm7, %v1714_v28, -inf  ;;  %v1822_v34 = vadd.f32 %v3465_v33, %v1821_v30  ;;  %v3341_v29 = vld [vmem:[#allocation11 + $0xd0] sm:$0xff]  ;;  %v3340_v30 = vld [vmem:[#allocation11 + $0xc8] sm:$0xff] }
 0x90e   :  { %1731 = vmax.xlane.f32.xlu2 %v1730_v32  ;;  %v3339_v32 = vld [vmem:[#allocation11 + $0xc0] sm:$0xff] }
 0x90f   :  { %v1828_v42 = vsel %vm707_vm7, %v1822_v34, -inf }
 0x910   :  { %1939 = vmatpush.bf16.msra.mxu0 %v3343_v0 }
 0x912   :  { %v1715_v36 = vpop.f32.mrf.mxu2  ;;  %v1726_v37 = vpop.f32.mrf.mxu3 }
 0x913   :  { %v1727_v16 = vadd.f32 %v3465_v33, %v1726_v37 }
 0x914   :  { %v1823_v35 = vpop.f32.mrf.mxu1 }
 0x915   :  { %v1733_v41 = vsel %vm707_vm7, %v1727_v16, -inf }
 0x916   :  { %1734 = vmax.xlane.f32.xlu0 %v1733_v41  ;;  %1829 = vmax.xlane.f32.xlu2 %v1828_v42 }
 0x91a   :  { %v1728_v43 = vpop.f32.mrf.mxu3 }
 0x97b   :  { %v1827_v31 = vpop.xlane.xlu1 %1826 }
 0x97c   :  { %v1831_v45 = vsub.f32 %v1809_v26, %v1827_v31  ;;  %v3332_v26 = vld [vmem:[#allocation11 + $0x88] sm:$0xff] }
 0x97d   :  { %2004 = vmatpush.bf16.msra.mxu1 %v3332_v26 }
 0x97e   :  { %v1833_v46 = vmul.f32 1.442695, %v1831_v45 }
 0x980   :  { %3434 = vpow2.f32 %v1833_v46  ;;  %v2012_v46 = vperm.slane %v3940_v40, 3 }
 0x981   :  { %v1732_v47 = vpop.xlane.xlu2 %1731  ;;  %2005 = vmatpush.bf16.msra.mxu1 %v3331_v27 }
 0x982   :  { %v1736_v49 = vsub.f32 %v1714_v28, %v1732_v47  ;;  %v3342_v28 = vld [vmem:[#allocation11 + $0xd8] sm:$0xff] }
 0x983   :  { %1940 = vmatpush.bf16.msra.mxu0 %v3342_v28  ;;  %v2061_v28 = vperm.slane %v3940_v40, 4 }
 0x984   :  { %v1738_v50 = vmul.f32 1.442695, %v1736_v49 }
 0x986   :  { %v3435_v51 = vpop.eup %3434  ;;  %3436 = vpow2.f32 %v1738_v50 }
 0x987   :  { %v1837_v52 = vsel %vm707_vm7, %v3435_v51, 0.0  ;;  %1941 = vmatpush.bf16.msra.mxu0 %v3341_v29 }
 0x988   :  { %1838 = vadd.xlane.f32.xlu2 %v1837_v52 }
 0x989   :  { %v1735_v53 = vpop.xlane.xlu0 %1734  ;;  %v1830_v54 = vpop.xlane.xlu2 %1829 }
 0x98a   :  { %v1737_v55 = vsub.f32 %v1727_v16, %v1735_v53  ;;  %v1832_v56 = vsub.f32 %v1822_v34, %v1830_v54 }
 0x98b   :  { %1942 = vmatpush.bf16.msra.mxu0 %v3340_v30 }
 0x98c   :  { %v3437_v57 = vpop.eup %3436  ;;  %v1740_v58 = vmul.f32 1.442695, %v1737_v55  ;;  %v1835_v59 = vmul.f32 1.442695, %v1832_v56 }
 0x98d   :  { %v1742_v60 = vsel %vm707_vm7, %v3437_v57, 0.0 }
 0x98e   :  { %3438 = vpow2.f32 %v1740_v58  ;;  %1743 = vadd.xlane.f32.xlu0 %v1742_v60  ;;  %v3353_v60 = vld [vmem:[#allocation13 + $0x70] sm:$0xff] }
 0x98f   :  { %3440 = vpow2.f32 %v1835_v59  ;;  %1943 = vmatpush.bf16.msra.mxu0 %v3339_v32  ;;  %v3354_v59 = vld [vmem:[#allocation13 + $0x78] sm:$0xff] }
 0x994   :  { %v3439_v61 = vpop.eup %3438 }
 0x995   :  { %v3441_v39 = vpop.eup %3440  ;;  %v1745_v8 = vsel %vm707_vm7, %v3439_v61, 0.0 }
 0x996   :  { %1746 = vadd.xlane.f32.xlu1 %v1745_v8  ;;  %v1840_v1 = vsel %vm707_vm7, %v3441_v39, 0.0  ;;  %v3349_v8 = vld [vmem:[#allocation13 + $0x50] sm:$0xff] }
 0x997   :  { %1841 = vadd.xlane.f32.xlu0 %v1840_v1 }
 0x9fb   :  { %v1839_v10 = vpop.xlane.xlu2 %1838 }
 0xa01   :  { %v1744_v2 = vpop.xlane.xlu0 %1743 }
 0xa02   :  { %3442 = vrcp.f32 %v1744_v2 }
 0xa08   :  { %v3443_v6 = vpop.eup %3442 }
 0xa09   :  { %v1750_v7 = vmul.f32 %v3443_v6, %v3437_v57  ;;  %v1747_v9 = vpop.xlane.xlu1 %1746 }
 0xa0a   :  { %3444 = vrcp.f32 %v1747_v9  ;;  %v1842_v18 = vpop.xlane.xlu0 %1841 }
 0xa0b   :  { %v1752_v11 = vpack.c.bf16 %v1750_v7, %v1750_v7  ;;  %3446 = vrcp.f32 %v1839_v10  ;;  %v3347_v7 = vld [vmem:[#allocation13 + $0x40] sm:$0xff] }
 0xa0c   :  { %3448 = vrcp.f32 %v1842_v18 }
 0xa0d   :  { %3007 = vmatmul.msk.bf16.vlgmr.msra.gmra.mxu2 %vm707_vm7, %v1752_v11 }
 0xa0e   :  { %2134 = vmatpush.bf16.msra.mxu2 %v3354_v59 }
 0xa10   :  { %v3445_v14 = vpop.eup %3444 }
 0xa11   :  { %v1751_v15 = vmul.f32 %v3445_v14, %v3439_v61  ;;  %v3447_v20 = vpop.eup %3446  ;;  %v3352_v61 = vld [vmem:[#allocation13 + $0x68] sm:$0xff] }
 0xa12   :  { %v1845_v21 = vmul.f32 %v3447_v20, %v3435_v51  ;;  %v3449_v62 = vpop.eup %3448  ;;  %2135 = vmatpush.bf16.msra.mxu2 %v3353_v60 }
 0xa13   :  { %v1753_v17 = vpack.c.bf16 %v1751_v15, %v1751_v15  ;;  %v1846_v22 = vmul.f32 %v3449_v62, %v3441_v39  ;;  %v3351_v39 = vld [vmem:[#allocation13 + $0x60] sm:$0xff] }
 0xa14   :  { %v1847_v63 = vpack.c.bf16 %v1845_v21, %v1845_v21 }
 0xa15   :  { %3008 = vmatmul.msk.bf16.vlgmr.msra.gmra.mxu3 %vm707_vm7, %v1753_v17  ;;  %v1848_v23 = vpack.c.bf16 %v1846_v22, %v1846_v22 }
 0xa16   :  { %2136 = vmatpush.bf16.msra.mxu2 %v3352_v61 }
 0xa1a   :  { %2137 = vmatpush.bf16.msra.mxu2 %v3351_v39 }
 0xa1d   :  { %3009 = vmatmul.msk.bf16.vlgmr.msrb.gmra.mxu2 %vm707_vm7, %v1847_v63 }
 0xa25   :  { %3010 = vmatmul.msk.bf16.vlgmr.msrb.gmra.mxu3 %vm707_vm7, %v1848_v23 }
 0xa90   :  { %v1769_v33 = vpop.f32.mrf.mxu2 }
 0xa98   :  { %v1771_v34 = vpop.f32.mrf.mxu2  ;;  %v1788_v36 = vpop.f32.mrf.mxu3 }
 0xa99   :  { %v1792_v37 = vpack.c.bf16 %v1788_v36, %v1769_v33  ;;  %v2064_v36 = vperm.slane %v3940_v40, 5 }
 0xa9b   :  { %2006 = vmatmul.bf16.vlgmr.msra.gmra.mxu1 %v1792_v37 }
 0xaa0   :  { %v1790_v16 = vpop.f32.mrf.mxu3  ;;  %v1864_v35 = vpop.f32.mrf.mxu2 }
 0xaa8   :  { %v1866_v41 = vpop.f32.mrf.mxu2  ;;  %v1883_v42 = vpop.f32.mrf.mxu3 }
 0xaa9   :  { %v1887_v43 = vpack.c.bf16 %v1883_v42, %v1864_v35  ;;  %v3362_v42 = vld [vmem:[#allocation14 + $0x78] sm:$0xff] }
 0xaaa   :  { %2233 = vmatpush.bf16.msra.mxu3 %v3362_v42  ;;  %v3378_v42 = vld [vmem:[#allocation17 + $0x38] sm:$0xff] }
 0xaab   :  { %1944 = vmatmul.bf16.vlgmr.msra.gmra.mxu0 %v1887_v43  ;;  %v3361_v43 = vld [vmem:[#allocation14 + $0x70] sm:$0xff]  ;;  %2455 = vmatpush.bf16.msrb.mxu1 %v3378_v42 }
 0xaae   :  { %2234 = vmatpush.bf16.msra.mxu3 %v3361_v43 }
 0xab0   :  { %v1885_v31 = vpop.f32.mrf.mxu3 }
 0xab1   :  { %v3360_v31 = vld [vmem:[#allocation14 + $0x68] sm:$0xff] }
 0xab2   :  { %2235 = vmatpush.bf16.msra.mxu3 %v3360_v31 }
 0xb18   :  { %v2007_v45 = vpop.f32.mrf.mxu1 }
 0xb20   :  { %v2009_v53 = vpop.f32.mrf.mxu1 }
 0xb28   :  { %v1945_v47 = vpop.f32.mrf.mxu0 }
 0xb29   :  { %v2008_v49 = vadd.f32 %v2007_v45, %v1945_v47  ;;  %v3359_v45 = vld [vmem:[#allocation14 + $0x60] sm:$0xff]  ;;  %v3357_v47 = vld [vmem:[#allocation14 + $0x50] sm:$0xff] }
 0xb2a   :  { %2236 = vmatpush.bf16.msra.mxu3 %v3359_v45  ;;  %v3377_v45 = vld [vmem:[#allocation17 + $0x30] sm:$0xff] }
 0xb2b   :  { %v2013_v50 = vadd.f32 %v2012_v46, %v2008_v49  ;;  %v3356_v49 = vld [vmem:[#allocation14 + $0x48] sm:$0xff]  ;;  %2456 = vmatpush.bf16.msrb.mxu1 %v3377_v45 }
 0xb2d   :  { %v2015_v51 = vadd.f32 %v2013_v50, %v3973_v38  ;;  %v3350_v38 = vld [vmem:[#allocation13 + $0x58] sm:$0xff]  ;;  %v3466_v50 = vld [vmem:[#allocation7 + $0x8] sm:$0xff] }
 0xb2e   :  { %2138 = vmatpush.bf16.msra.mxu2 %v3350_v38  ;;  %v2085_v40 = vperm.slane %v3466_v50, 6 }
 0xb2f   :  { %2017 = vadd.xlane.f32.xlu1 %v2015_v51  ;;  %v2021_v52 = vmul.f32 %v2015_v51, %v2015_v51 }
 0xb30   :  { %v1947_v54 = vpop.f32.mrf.mxu0 }
 0xb31   :  { %v2010_v55 = vadd.f32 %v2009_v53, %v1947_v54  ;;  %2023 = vadd.xlane.f32.xlu0 %v2021_v52  ;;  %v3355_v52 = vld [vmem:[#allocation14 + $0x40] sm:$0xff] }
 0xb32   :  { %2139 = vmatpush.bf16.msra.mxu2 %v3349_v8 }
 0xb33   :  { %v2014_v56 = vadd.f32 %v2012_v46, %v2010_v55  ;;  %v3358_v46 = vld [vmem:[#allocation14 + $0x58] sm:$0xff] }
 0xb34   :  { %2237 = vmatpush.bf16.msra.mxu3 %v3358_v46 }
 0xb35   :  { %v2016_v57 = vadd.f32 %v2014_v56, %v3975_v44 }
 0xb36   :  { %2140 = vmatpush.bf16.msra.mxu2 %v3348_v5 }
 0xb37   :  { %2019 = vadd.xlane.f32.xlu2 %v2016_v57  ;;  %v2022_v58 = vmul.f32 %v2016_v57, %v2016_v57 }
 0xb38   :  { %2238 = vmatpush.bf16.msra.mxu3 %v3357_v47 }
 0xb39   :  { %2025 = vadd.xlane.f32.xlu1 %v2022_v58 }
 0xb3a   :  { %2141 = vmatpush.bf16.msra.mxu2 %v3347_v7 }
 0xb3c   :  { %2239 = vmatpush.bf16.msra.mxu3 %v3356_v49  ;;  %v3376_v49 = vld [vmem:[#allocation17 + $0x28] sm:$0xff] }
 0xb3d   :  { %2457 = vmatpush.bf16.msrb.mxu1 %v3376_v49 }
 0xb40   :  { %2240 = vmatpush.bf16.msra.mxu3 %v3355_v52 }
 0xba2   :  { %v2018_v1 = vpop.xlane.xlu1 %2017 }
 0xba3   :  { %v2027_v2 = vmul.f32 0.03125, %v2018_v1 }
 0xba4   :  { %v2024_v3 = vpop.xlane.xlu0 %2023 }
 0xba5   :  { %v2031_v4 = vmul.f32 %v2027_v2, %v2027_v2  ;;  %v2029_v44 = vmul.f32 0.03125, %v2024_v3  ;;  %v2035_v26 = vsub.f32 %v2015_v51, %v2027_v2 }
 0xba7   :  { %v2033_v6 = vsub.f32 %v2029_v44, %v2031_v4 }
 0xba9   :  { %v2037_v9 = vadd.f32 1e-12, %v2033_v6 }
 0xbaa   :  { %v2020_v10 = vpop.xlane.xlu2 %2019 }
 0xbab   :  { %3450 = vrsqrt.f32 %v2037_v9  ;;  %v2028_v11 = vmul.f32 0.03125, %v2020_v10  ;;  %vm2045_vm5 = vweird.f32 %v2037_v9 }
 0xbac   :  { %v2026_v12 = vpop.xlane.xlu1 %2025 }
 0xbad   :  { %v2032_v13 = vmul.f32 %v2028_v11, %v2028_v11  ;;  %v2030_v14 = vmul.f32 0.03125, %v2026_v12  ;;  %v2036_v30 = vsub.f32 %v2016_v57, %v2028_v11  ;;  %v2184_v11 = vperm.slane %v3466_v50, 7 }
 0xbaf   :  { %v2034_v15 = vsub.f32 %v2030_v14, %v2032_v13 }
 0xbb1   :  { %v3451_v17 = vpop.eup %3450  ;;  %v2038_v18 = vadd.f32 1e-12, %v2034_v15 }
 0xbb2   :  { %v2040_v19 = vmul.f32 %v3451_v17, %v2037_v9  ;;  %vm2046_vm4 = vweird.f32 %v3451_v17 }
 0xbb3   :  { %3452 = vrsqrt.f32 %v2038_v18  ;;  %vm2047_vm6 = vmor %vm2045_vm5, %vm2046_vm4  ;;  %vm2055_vm8 = vweird.f32 %v2038_v18 }
 0xbb4   :  { %v2041_v20 = vmul.f32 %v3451_v17, %v2040_v19 }
 0xbb6   :  { %v2042_v21 = vmul.f32 0.5, %v2041_v20 }
 0xbb8   :  { %v2043_v63 = vsub.f32 1.5, %v2042_v21  ;;  %v3370_v21 = vld [vmem:[#allocation16 + $0x38] sm:$0xff] }
 0xbb9   :  { %v3453_v62 = vpop.eup %3452  ;;  %2375 = vmatpush.bf16.msrb.mxu0 %v3370_v21 }
 0xbba   :  { %v2044_v22 = vmul.f32 %v3451_v17, %v2043_v63  ;;  %v2050_v23 = vmul.f32 %v3453_v62, %v2038_v18  ;;  %vm2056_vm7 = vweird.f32 %v3453_v62  ;;  %v3369_v63 = vld [vmem:[#allocation16 + $0x30] sm:$0xff] }
 0xbbb   :  { %vm2057_vm9 = vmor %vm2055_vm8, %vm2056_vm7 }
 0xbbc   :  { %v2051_v24 = vmul.f32 %v3453_v62, %v2050_v23  ;;  %v2048_v48 = vsel %vm2047_vm6, %v3451_v17, %v2044_v22  ;;  %v3367_v22 = vld [vmem:[#allocation16 + $0x20] sm:$0xff]  ;;  %v3366_v23 = vld [vmem:[#allocation16 + $0x18] sm:$0xff] }
 0xbbd   :  { %v2059_v27 = vmul.f32 %v2048_v48, %v2035_v26  ;;  %2376 = vmatpush.bf16.msrb.mxu0 %v3369_v63 }
 0xbbe   :  { %v2052_v25 = vmul.f32 0.5, %v2051_v24 }
 0xbbf   :  { %v2062_v34 = vmul.f32 %v2061_v28, %v2059_v27 }
 0xbc0   :  { %v2053_v0 = vsub.f32 1.5, %v2052_v25 }
 0xbc1   :  { %v2065_v16 = vadd.f32 %v2064_v36, %v2062_v34 }
 0xbc2   :  { %v2054_v29 = vmul.f32 %v3453_v62, %v2053_v0  ;;  %v3365_v0 = vld [vmem:[#allocation16 + $0x10] sm:$0xff] }
 0xbc4   :  { %v2058_v32 = vsel %vm2057_vm9, %v3453_v62, %v2054_v29  ;;  %v3368_v62 = vld [vmem:[#allocation16 + $0x28] sm:$0xff] }
 0xbc5   :  { %v2060_v33 = vmul.f32 %v2058_v32, %v2036_v30  ;;  %2377 = vmatpush.bf16.msrb.mxu0 %v3368_v62  ;;  %v3364_v29 = vld [vmem:[#allocation16 + $0x8] sm:$0xff] }
 0xbc7   :  { %v2063_v37 = vmul.f32 %v2061_v28, %v2060_v33 }
 0xbc9   :  { %v2066_v35 = vadd.f32 %v2064_v36, %v2063_v37  ;;  %2378 = vmatpush.bf16.msrb.mxu0 %v3367_v22  ;;  %v3363_v36 = vld [vmem:[#allocation16] sm:$0xff] }
 0xbcb   :  { %v2067_v41 = vpack.c.bf16 %v2066_v35, %v2065_v16 }
 0xbcd   :  { %2142 = vmatmul.bf16.vlgmr.msra.gmra.mxu2 %v2067_v41  ;;  %2379 = vmatpush.bf16.msrb.mxu0 %v3366_v23 }
 0xbd1   :  { %2380 = vmatpush.bf16.msrb.mxu0 %v3365_v0 }
 0xbd5   :  { %2381 = vmatpush.bf16.msrb.mxu0 %v3364_v29 }
 0xbd9   :  { %2382 = vmatpush.bf16.msrb.mxu0 %v3363_v36 }
 0xc50   :  { %v2143_v51 = vpop.f32.mrf.mxu2 }
 0xc51   :  { %v2144_v53 = vadd.f32 %v2143_v51, %v2085_v40 }
 0xc53   :  { %v2148_v54 = vmul.f32 %v2144_v53, %v2144_v53 }
 0xc55   :  { %v2150_v55 = vmul.f32 %v2148_v54, %v2144_v53 }
 0xc57   :  { %v2152_v56 = vmul.f32 0.044715, %v2150_v55  ;;  %v3375_v55 = vld [vmem:[#allocation17 + $0x20] sm:$0xff] }
 0xc58   :  { %v2145_v57 = vpop.f32.mrf.mxu2  ;;  %2458 = vmatpush.bf16.msrb.mxu1 %v3375_v55 }
 0xc59   :  { %v2154_v58 = vadd.f32 %v2152_v56, %v2144_v53  ;;  %v2146_v59 = vadd.f32 %v2145_v57, %v2085_v40  ;;  %v195_v40 = vld [vmem:[#allocation7 + $0x10] sm:$0x3] }
 0xc5a   :  { %v2293_v57 = vperm.slane %v195_v40, 0 }
 0xc5b   :  { %v2156_v60 = vmul.f32 0.7978846, %v2154_v58  ;;  %v2149_v61 = vmul.f32 %v2146_v59, %v2146_v59 }
 0xc5d   :  { %v2151_v39 = vmul.f32 %v2149_v61, %v2146_v59  ;;  %3454 = vtanh.f32 %v2156_v60  ;;  %v2296_v61 = vperm.slane %v195_v40, 1 }
 0xc5f   :  { %v2153_v38 = vmul.f32 0.044715, %v2151_v39 }
 0xc61   :  { %v2155_v8 = vadd.f32 %v2153_v38, %v2146_v59  ;;  %v3374_v38 = vld [vmem:[#allocation17 + $0x18] sm:$0xff] }
 0xc62   :  { %2459 = vmatpush.bf16.msrb.mxu1 %v3374_v38 }
 0xc63   :  { %v2157_v1 = vmul.f32 0.7978846, %v2155_v8  ;;  %v3455_v2 = vpop.eup %3454 }
 0xc64   :  { %v2160_v3 = vadd.f32 1.0, %v3455_v2 }
 0xc65   :  { %3456 = vtanh.f32 %v2157_v1 }
 0xc66   :  { %v2162_v44 = vmul.f32 0.5, %v2160_v3 }
 0xc68   :  { %v2164_v7 = vmul.f32 %v2162_v44, %v2144_v53 }
 0xc6b   :  { %v3457_v4 = vpop.eup %3456 }
 0xc6c   :  { %v2161_v5 = vadd.f32 1.0, %v3457_v4 }
 0xc6e   :  { %v2163_v6 = vmul.f32 0.5, %v2161_v5 }
 0xc70   :  { %v2165_v9 = vmul.f32 %v2163_v6, %v2146_v59 }
 0xc72   :  { %v2166_v10 = vpack.c.bf16 %v2165_v9, %v2164_v7 }
 0xc74   :  { %2241 = vmatmul.bf16.vlgmr.msra.gmra.mxu3 %v2166_v10 }
 0xcf7   :  { %v2242_v12 = vpop.f32.mrf.mxu3 }
 0xcf8   :  { %v2243_v13 = vadd.f32 %v2242_v12, %v2184_v11 }
 0xcfa   :  { %v4000_v14 = vadd.f32 %v2243_v13, %v2065_v16 }
 0xcfc   :  { %2249 = vadd.xlane.f32.xlu0 %v4000_v14  ;;  %v2253_v20 = vmul.f32 %v4000_v14, %v4000_v14 }
 0xcff   :  { %v2244_v15 = vpop.f32.mrf.mxu3 }
 0xd00   :  { %v2245_v17 = vadd.f32 %v2244_v15, %v2184_v11 }
 0xd02   :  { %v4003_v18 = vadd.f32 %v2245_v17, %v2066_v35  ;;  %v3373_v17 = vld [vmem:[#allocation17 + $0x10] sm:$0xff] }
 0xd03   :  { %2460 = vmatpush.bf16.msrb.mxu1 %v3373_v17 }
 0xd04   :  { %2251 = vadd.xlane.f32.xlu2 %v4003_v18  ;;  %v2254_v19 = vmul.f32 %v4003_v18, %v4003_v18 }
 0xd06   :  { %2257 = vadd.xlane.f32.xlu1 %v2254_v19  ;;  %v3467_v19 = vld [vmem:[#allocation7] sm:$0xff] }
 0xd0c   :  { %2255 = vadd.xlane.f32.xlu2 %v2253_v20  ;;  %v2317_v20 = vperm.slane %v3467_v19, 2 }
 0xd6f   :  { %v2250_v25 = vpop.xlane.xlu0 %2249 }
 0xd70   :  { %v2259_v30 = vmul.f32 0.03125, %v2250_v25 }
 0xd72   :  { %v2263_v37 = vmul.f32 %v2259_v30, %v2259_v30  ;;  %v2267_v2 = vsub.f32 %v4000_v14, %v2259_v30  ;;  %v3371_v14 = vld [vmem:[#allocation17] sm:$0xff] }
 0xd77   :  { %v2252_v24 = vpop.xlane.xlu2 %2251 }
 0xd78   :  { %v2260_v48 = vmul.f32 0.03125, %v2252_v24  ;;  %v2406_v24 = vperm.slane %v3467_v19, 3 }
 0xd79   :  { %v2258_v26 = vpop.xlane.xlu1 %2257 }
 0xd7a   :  { %v2264_v27 = vmul.f32 %v2260_v48, %v2260_v48  ;;  %v2262_v28 = vmul.f32 0.03125, %v2258_v26  ;;  %v2268_v56 = vsub.f32 %v4003_v18, %v2260_v48  ;;  %v3372_v18 = vld [vmem:[#allocation17 + $0x8] sm:$0xff] }
 0xd7b   :  { %2461 = vmatpush.bf16.msrb.mxu1 %v3372_v18 }
 0xd7c   :  { %v2266_v32 = vsub.f32 %v2262_v28, %v2264_v27 }
 0xd7e   :  { %v2270_v33 = vadd.f32 1e-12, %v2266_v32 }
 0xd7f   :  { %v2256_v34 = vpop.xlane.xlu2 %2255  ;;  %2462 = vmatpush.bf16.msrb.mxu1 %v3371_v14 }
 0xd80   :  { %3458 = vrsqrt.f32 %v2270_v33  ;;  %v2261_v16 = vmul.f32 0.03125, %v2256_v34  ;;  %vm2287_vm11 = vweird.f32 %v2270_v33 }
 0xd82   :  { %v2265_v35 = vsub.f32 %v2261_v16, %v2263_v37 }
 0xd84   :  { %v2269_v41 = vadd.f32 1e-12, %v2265_v35 }
 0xd86   :  { %v3459_v43 = vpop.eup %3458  ;;  %3460 = vrsqrt.f32 %v2269_v41  ;;  %vm2277_vm14 = vweird.f32 %v2269_v41 }
 0xd87   :  { %v2282_v31 = vmul.f32 %v3459_v43, %v2270_v33  ;;  %vm2288_vm10 = vweird.f32 %v3459_v43 }
 0xd88   :  { %vm2289_vm12 = vmor %vm2287_vm11, %vm2288_vm10 }
 0xd89   :  { %v2283_v46 = vmul.f32 %v3459_v43, %v2282_v31 }
 0xd8b   :  { %v2284_v47 = vmul.f32 0.5, %v2283_v46 }
 0xd8c   :  { %v3461_v50 = vpop.eup %3460 }
 0xd8d   :  { %v2285_v51 = vsub.f32 1.5, %v2284_v47  ;;  %v2272_v52 = vmul.f32 %v3461_v50, %v2269_v41  ;;  %vm2278_vm13 = vweird.f32 %v3461_v50 }
 0xd8e   :  { %vm2279_vm15 = vmor %vm2277_vm14, %vm2278_vm13 }
 0xd8f   :  { %v2286_v53 = vmul.f32 %v3459_v43, %v2285_v51  ;;  %v2273_v54 = vmul.f32 %v3461_v50, %v2272_v52 }
 0xd91   :  { %v2290_v58 = vsel %vm2289_vm12, %v3459_v43, %v2286_v53  ;;  %v2274_v59 = vmul.f32 0.5, %v2273_v54 }
 0xd92   :  { %v2292_v60 = vmul.f32 %v2290_v58, %v2268_v56 }
 0xd93   :  { %v2275_v39 = vsub.f32 1.5, %v2274_v59 }
 0xd94   :  { %v2295_v8 = vmul.f32 %v2293_v57, %v2292_v60 }
 0xd95   :  { %v2276_v1 = vmul.f32 %v3461_v50, %v2275_v39 }
 0xd96   :  { %v2298_v3 = vadd.f32 %v2296_v61, %v2295_v8 }
 0xd97   :  { %v2280_v4 = vsel %vm2279_vm15, %v3461_v50, %v2276_v1 }
 0xd98   :  { %v2291_v44 = vmul.f32 %v2280_v4, %v2267_v2  ;;  %v2300_v5 = vpack.c.bf16 %v2298_v3, %v2298_v3 }
 0xd9a   :  { %v2294_v6 = vmul.f32 %v2293_v57, %v2291_v44  ;;  %v2321_v9 = vunpack.c.l.b16 %v2300_v5 }
 0xd9c   :  { %v2297_v7 = vadd.f32 %v2296_v61, %v2294_v6  ;;  %v2322_v12 = vrot.slane %v2321_v9, 7 }
 0xd9e   :  { %v2299_v10 = vpack.c.bf16 %v2297_v7, %v2297_v7 }
 0xda0   :  { %v2320_v11 = vunpack.c.l.b16 %v2299_v10 }
 0xda2   :  { %v2324_v13 = vsel %vm2323_vm0, %v2322_v12, %v2320_v11 }
 0xda3   :  { %v2325_v15 = vpack.c.b16 %v2324_v13, %v2324_v13 }
 0xda5   :  { %2383 = vmatmul.bf16.vlgmr.msrb.gmra.mxu0 %v2325_v15 }
 0xe22   :  { %v2384_v21 = vpop.f32.mrf.mxu0 }
 0xe23   :  { %v2385_v63 = vadd.f32 %v2384_v21, %v2317_v20 }
 0xe25   :  { %3462 = vtanh.f32 %v2385_v63 }
 0xe2a   :  { %v2386_v62 = vpop.f32.mrf.mxu0 }
 0xe2b   :  { %v3463_v22 = vpop.eup %3462 }
 0xe2c   :  { %v2389_v23 = vpack.c.bf16 %v3463_v22, %v3463_v22 }
 0xe2e   :  { %2463 = vmatmul.bf16.vlgmr.msrb.gmra.mxu1 %v2389_v23 }
 0xeab   :  { %v2464_v48 = vpop.f32.mrf.mxu1 }
 0xeac   :  { %v2465_v25 = vadd.f32 %v2464_v48, %v2406_v24 }
 0xeae   :  { %2468 = vst [vmem:[#allocation19] sm:$0x3] %v2465_v25 }
 0xeaf   :  { %2479 = dma.vmem_to_hbm [thread:$0]  %s2475_s13, 32, %s2477_s23, [#allocation4]  }
 0xeb3   :  { %v2466_v26 = vpop.f32.mrf.mxu1 }
 0xeb4   :  { %3744 = dma.done.wait [#allocation4], 32  }
 0xeb5   :  { %3745 = vsyncadd [#allocation4], 4294967264 }
 0xeb6   :  { %2484 = vsyncpa [#allocation3], 1 }
 0xeb7   :  { %2485 = vsyncpa [#allocation6], 1 }
 0xeb8   :  { %2486 = vsyncpa [#allocation9], 1 }
 0xeb9   :  { %2487 = vsyncpa [#allocation12], 1 }
 0xeba   :  { %2488 = vsyncpa [#allocation15], 1 }
 0xebb   :  { %2489 = vsyncpa [#allocation18], 1 }
 0xebc   :  { %2490 = vsyncpa [#allocation4], 1 }

</bundles_post_ra>
